<compile_context>
chip_gen: v7x
topology: tpu7x:2x2x1
jax: 0.10.0
libtpu: 0.0.40
codegen_flags: <defaults>
</compile_context>

<pallas_src>
import functools

import jax
import jax.numpy as jnp
from jax import lax
from jax.experimental import pallas as pl
from jax.experimental.pallas import tpu as pltpu

# Headroom under v7x's 64 MiB physical VMEM; also above v5e's 16 MiB default.
_VMEM_LIMIT = 48 * 1024 * 1024


def _row_tile(n, pref):
    """Largest row tile that divides n, is a multiple of 8 and is <= pref."""
    if n <= pref:
        return n
    t = (pref // 8) * 8
    while t >= 8:
        if n % t == 0:
            return t
        t -= 8
    return n


# ---------------------------------------------------------------------------
# Kernel 1: fused SPFP MLP + resid_loc + grid_sample (all maps) + linear MLP.
# Grid = (B, N // TM).  Output is the refine-stage input laid out as
# [loc | x_feat | linear(pool_feat)]  (the host-side concats are folded in).
# ---------------------------------------------------------------------------
def _spfp_linear_kernel(*args, num_maps, map_hw):
    nm = num_maps
    loc_ref, feat_ref = args[0], args[1]
    a = 2
    fmap_refs = args[a:a + nm]
    a += nm
    idx_refs = args[a:a + nm]
    a += nm
    (w1l_ref, w1f_ref, b1_ref, w2_ref, b2_ref,
     wrl_ref, wrf_ref, br_ref) = args[a:a + 8]
    a += 8
    wl1_refs = args[a:a + nm]
    a += nm
    bl1_ref, wl2_ref, bl2_ref = args[a:a + 3]
    a += 3
    o_ref = args[a]

    loc = loc_ref[0]                                   # (TM, 3) f32
    feat = feat_ref[0]                                 # (TM, Cin) f32
    locb = loc.astype(jnp.bfloat16)
    featb = feat.astype(jnp.bfloat16)

    # SPFP SharedMLP([Cin+3, mid, mid]) + outer ReLU; cat([loc, feat]) folded
    # into split weights: [loc|feat] @ W1 == loc @ W1[:3] + feat @ W1[3:].
    h1 = (jnp.dot(locb, w1l_ref[...], preferred_element_type=jnp.float32)
          + jnp.dot(featb, w1f_ref[...], preferred_element_type=jnp.float32)
          + b1_ref[...])
    h1 = jnp.maximum(h1, 0.0)
    h2 = (jnp.dot(h1.astype(jnp.bfloat16), w2_ref[...],
                  preferred_element_type=jnp.float32) + b2_ref[...])
    h2 = jnp.maximum(h2, 0.0)                          # (TM, mid) f32

    # resid_loc (1x1 conv -> 2 channels), kept f32 (sampling coordinates).
    grid2 = (jnp.dot(loc, wrl_ref[...], preferred_element_type=jnp.float32)
             + jnp.dot(h2, wrf_ref[...], preferred_element_type=jnp.float32)
             + br_ref[...])                            # (TM, 2)
    gx = grid2[:, 0:1]                                 # width coord (x)
    gy = grid2[:, 1:2]                                 # height coord (y)

    # grid_sample(bilinear, padding='border', align_corners=False) + the first
    # `linear` conv, accumulated over the per-map channel chunks of W_lin1.
    lin = bl1_ref[...]                                 # (1, featC), broadcasts
    for m in range(nm):
        H, W = map_hw[m]
        f = fmap_refs[m][0]                            # (HW, Cm) bf16
        ph = idx_refs[m][0:1, :]                       # (1, HW) int32 pixel row
        pw = idx_refs[m][1:2, :]                       # (1, HW) int32 pixel col

        ix = jnp.clip((gx + 1.0) * (0.5 * W) - 0.5, 0.0, W - 1.0)
        iy = jnp.clip((gy + 1.0) * (0.5 * H) - 0.5, 0.0, H - 1.0)
        x0 = jnp.floor(ix)
        y0 = jnp.floor(iy)
        wx = ix - x0
        wy = iy - y0
        x0i = x0.astype(jnp.int32)
        y0i = y0.astype(jnp.int32)
        x1i = jnp.minimum(x0i + 1, W - 1)
        y1i = jnp.minimum(y0i + 1, H - 1)

        # factored (separable) bilinear weights — no int div/mod in-kernel.
        row_w = (jnp.where(ph == y0i, 1.0 - wy, 0.0)
                 + jnp.where(ph == y1i, wy, 0.0))      # (TM, HW)
        col_w = (jnp.where(pw == x0i, 1.0 - wx, 0.0)
                 + jnp.where(pw == x1i, wx, 0.0))      # (TM, HW)
        wmat = (row_w * col_w).astype(jnp.bfloat16)    # one-hot bilinear matrix

        pooled = jnp.dot(wmat, f, preferred_element_type=jnp.float32)  # (TM,Cm)
        lin = lin + jnp.dot(pooled.astype(jnp.bfloat16), wl1_refs[m][...],
                            preferred_element_type=jnp.float32)

    lin = jnp.maximum(lin, 0.0)                        # ReLU inside SharedMLP
    lin = (jnp.dot(lin.astype(jnp.bfloat16), wl2_ref[...],
                   preferred_element_type=jnp.float32) + bl2_ref[...])

    # Fused output concat: the refine stage consumes [loc | feat | lin].
    o_ref[0] = jnp.concatenate(
        [locb, featb, lin.astype(jnp.bfloat16)], axis=-1)


def spfp_linear_fused(loc, feat, fmaps, idxs, map_hw, p, *, row_tile=256):
    B, N, _ = loc.shape
    cin = feat.shape[-1]
    featc = p["wl2"].shape[1]
    cout = 3 + cin + featc
    nm = len(fmaps)
    tm = _row_tile(N, row_tile)
    grid = (B, N // tm)

    def tiled3(shape):
        return pl.BlockSpec(shape, lambda b, i: (b, i, 0))

    def batch3(shape):
        return pl.BlockSpec(shape, lambda b, i: (b, 0, 0))

    def whole2(shape):
        return pl.BlockSpec(shape, lambda b, i: (0, 0))

    weights = [p["w1_loc"], p["w1_feat"], p["b1"], p["w2"], p["b2"],
               p["wr_loc"], p["wr_feat"], p["br"]]
    weights += list(p["wl1_chunks"])
    weights += [p["bl1"], p["wl2"], p["bl2"]]

    in_specs = [tiled3((1, tm, 3)), tiled3((1, tm, cin))]
    in_specs += [batch3((1, f.shape[1], f.shape[2])) for f in fmaps]
    in_specs += [whole2(idx.shape) for idx in idxs]
    in_specs += [whole2(w.shape) for w in weights]

    return pl.pallas_call(
        functools.partial(_spfp_linear_kernel, num_maps=nm,
                          map_hw=tuple(map_hw)),
        grid=grid,
        in_specs=in_specs,
        out_specs=pl.BlockSpec((1, tm, cout), lambda b, i: (b, i, 0)),
        out_shape=jax.ShapeDtypeStruct((B, N, cout), jnp.bfloat16),
        compiler_params=pltpu.CompilerParams(
            dimension_semantics=("parallel", "parallel"),
            vmem_limit_bytes=_VMEM_LIMIT),
    )(loc, feat, *fmaps, *idxs, *weights)


# ---------------------------------------------------------------------------
# Kernel 2: per-batch knn_graph(k, no self loops) -> neighbour indices.
# Computed ONCE and reused by all three GraphConv layers (loc never changes).
#   score(i, j) = |p_j|^2 - 2 q_i . p_j   via (TQ,4) @ (4,N) with augmented
#   coords; keys are passed pre-transposed (lane-dense, N on lanes).
# Exactly one index is selected per round (ties broken by smallest index), so
# every query gets exactly k neighbours.
# ---------------------------------------------------------------------------
def _knn_kernel(locA_ref, locBT_ref, o_idx_ref, *, k, tq):
    locA = locA_ref[0]                                 # (TQ, 4): [-2x,-2y,-2z,1]
    locBT = locBT_ref[0]                               # (4, N): [x; y; z; |p|^2]
    n = locBT.shape[1]

    # TODO(synk): default MXU f32 precision (bf16 multi-pass) can flip
    # near-tied neighbour choices vs. an exact f32 cdist; tolerance documented.
    score = jnp.dot(locA, locBT,
                    preferred_element_type=jnp.float32)            # (TQ, N)

    q0 = pl.program_id(1) * tq
    row = q0 + lax.broadcasted_iota(jnp.int32, (tq, 1), 0)         # (TQ, 1)
    col = lax.broadcasted_iota(jnp.int32, (1, n), 1)               # (1, N)
    colf = col.astype(jnp.float32)
    big = jnp.float32(1e30)
    score = jnp.where(row == col, big, score)          # knn_graph: no self loops

    idx_cols = []
    for r in range(k):
        smin = jnp.min(score, axis=1, keepdims=True)               # (TQ, 1)
        ismin = score <= smin                                      # (TQ, N)
        # first (smallest-index) column attaining the min — exactly one pick
        idx_f = jnp.min(jnp.where(ismin, colf, jnp.float32(n)),
                        axis=1, keepdims=True)                     # (TQ, 1) f32
        idx_cols.append(idx_f.astype(jnp.int32))
        if r + 1 < k:                                  # skip dead work last round
            score = jnp.where(colf == idx_f, big, score)

    o_idx_ref[0] = jnp.concatenate(idx_cols, axis=1)   # (TQ, k) int32


def knn_indices(locA, locBT, *, k=3, row_tile=128):
    B, N, _ = locA.shape
    tq = _row_tile(N, row_tile)
    grid = (B, N // tq)
    return pl.pallas_call(
        functools.partial(_knn_kernel, k=k, tq=tq),
        grid=grid,
        in_specs=[pl.BlockSpec((1, tq, 4), lambda b, i: (b, i, 0)),
                  pl.BlockSpec((1, 4, N), lambda b, i: (b, 0, 0))],
        out_specs=pl.BlockSpec((1, tq, k), lambda b, i: (b, i, 0)),
        out_shape=jax.ShapeDtypeStruct((B, N, k), jnp.int32),
        compiler_params=pltpu.CompilerParams(
            dimension_semantics=("parallel", "parallel"),
            vmem_limit_bytes=_VMEM_LIMIT),
    )(locA, locBT)


# ---------------------------------------------------------------------------
# Kernel 3: PyG GraphConv with precomputed kNN indices.
#   Input cur_ext already carries cat([loc, feat]) (width 3+C), weights are
#   the merged (3+C, cout) matrices, so the kernel does one N-contraction:
#     out_i = ReLU( W_rel (sum_{j in kNN(i)} cur_ext_j) + b_rel
#                   + W_root cur_ext_i )
#   gc1/gc2 emit [loc | out] so the next layer's concat is free; the last
#   layer fuses the refinement loc head new_loc = loc + tanh([loc|out] W + b).
# ---------------------------------------------------------------------------
def _gconv_body(idx_ref, cur_ref, curq_ref, wrel_ref, brel_ref, wroot_ref):
    nbr = idx_ref[0]                                   # (TQ, k) int32
    cur = cur_ref[0]                                   # (N, C)  bf16 [loc|feat]
    curq = curq_ref[0]                                 # (TQ, C) bf16
    n = cur.shape[0]
    k = nbr.shape[1]

    # Rebuild the one-hot adjacency from the shared kNN indices: k broadcast
    # compares against a (1, N) column iota — no score matmul, no min loops.
    col = lax.broadcasted_iota(jnp.int32, (1, n), 1)
    adj = col == nbr[:, 0:1]
    for kk in range(1, k):
        adj = jnp.logical_or(adj, col == nbr[:, kk:kk + 1])
    adjb = adj.astype(jnp.bfloat16)                    # (TQ, N)

    agg = jnp.dot(adjb, cur, preferred_element_type=jnp.float32)   # (TQ, C)
    out = (jnp.dot(agg.astype(jnp.bfloat16), wrel_ref[...],
                   preferred_element_type=jnp.float32)
           + brel_ref[...]
           + jnp.dot(curq, wroot_ref[...],
                     preferred_element_type=jnp.float32))
    return jnp.maximum(out, 0.0), curq[:, 0:3]


def _gconv_kernel(idx_ref, cur_ref, curq_ref, wrel_ref, brel_ref, wroot_ref,
                  o_ref):
    out, loc_pass = _gconv_body(idx_ref, cur_ref, curq_ref,
                                wrel_ref, brel_ref, wroot_ref)
    # output [loc | relu(out)]: next layer's cat([loc, feat]) is already done
    o_ref[0] = jnp.concatenate(
        [loc_pass.astype(o_ref.dtype), out.astype(o_ref.dtype)], axis=-1)


def _gconv_loc_kernel(idx_ref, cur_ref, curq_ref, loc_ref,
                      wrel_ref, brel_ref, wroot_ref,
                      wll_ref, wlf_ref, bl_ref,
                      o_feat_ref, o_loc_ref):
    out, _ = _gconv_body(idx_ref, cur_ref, curq_ref,
                         wrel_ref, brel_ref, wroot_ref)
    o_feat_ref[0] = out.astype(o_feat_ref.dtype)
    # fused refinement loc head (exact f32 loc): loc + tanh([loc|out] @ W + b)
    loc = loc_ref[0]                                   # (TQ, 3) f32
    logits = (jnp.dot(loc, wll_ref[...], preferred_element_type=jnp.float32)
              + jnp.dot(out, wlf_ref[...], preferred_element_type=jnp.float32)
              + bl_ref[...])
    o_loc_ref[0] = (loc + jnp.tanh(logits)).astype(o_loc_ref.dtype)


def pcd_graphconv(nbr_idx, cur_ext, gp, *, row_tile=128,
                  loc_head=None, loc=None, out_dtype=jnp.bfloat16):
    B, N, C = cur_ext.shape
    k = nbr_idx.shape[-1]
    cout = gp["w_rel"].shape[1]
    tq = _row_tile(N, row_tile)
    grid = (B, N // tq)

    weights = [gp["w_rel"], gp["b_rel"], gp["w_root"]]
    in_specs = [
        pl.BlockSpec((1, tq, k), lambda b, i: (b, i, 0)),     # kNN indices tile
        pl.BlockSpec((1, N, C), lambda b, i: (b, 0, 0)),      # cur_ext (all pts)
        pl.BlockSpec((1, tq, C), lambda b, i: (b, i, 0)),     # cur_ext (queries)
    ]
    args = [nbr_idx, cur_ext, cur_ext]

    cparams = pltpu.CompilerParams(
        dimension_semantics=("parallel", "parallel"),
        vmem_limit_bytes=_VMEM_LIMIT)

    if loc_head is None:
        in_specs += [pl.BlockSpec(w.shape, lambda b, i: (0, 0))
                     for w in weights]
        return pl.pallas_call(
            _gconv_kernel,
            grid=grid,
            in_specs=in_specs,
            out_specs=pl.BlockSpec((1, tq, 3 + cout), lambda b, i: (b, i, 0)),
            out_shape=jax.ShapeDtypeStruct((B, N, 3 + cout), out_dtype),
            compiler_params=cparams,
        )(*(args + weights))

    wll, wlf, bl = loc_head
    in_specs += [pl.BlockSpec((1, tq, 3), lambda b, i: (b, i, 0))]  # f32 loc
    in_specs += [pl.BlockSpec(w.shape, lambda b, i: (0, 0))
                 for w in weights + [wll, wlf, bl]]
    return pl.pallas_call(
        _gconv_loc_kernel,
        grid=grid,
        in_specs=in_specs,
        out_specs=(pl.BlockSpec((1, tq, cout), lambda b, i: (b, i, 0)),
                   pl.BlockSpec((1, tq, 3), lambda b, i: (b, i, 0))),
        out_shape=(jax.ShapeDtypeStruct((B, N, cout), jnp.float32),
                   jax.ShapeDtypeStruct((B, N, 3), jnp.float32)),
        compiler_params=cparams,
    )(*(args + [loc] + weights + [wll, wlf, bl]))


# ---------------------------------------------------------------------------
# Parameter init (deterministic; shapes follow the PyTorch __init__).
# GraphConv weights are stored merged over the [loc | feat] concat.
# ---------------------------------------------------------------------------
def init_params(key, in_channels, pool_cs, feat_channels, out_channels):
    mid = in_channels // 2
    refine_in = feat_channels + in_channels
    mid_r = (refine_in + out_channels) // 2

    kiter = iter(jax.random.split(key, 64))

    def w(cin, cout, dtype=jnp.bfloat16, scale=0.2):
        return (scale * jax.random.normal(next(kiter), (cin, cout),
                                          jnp.float32)).astype(dtype)

    def b(cout, scale=0.2):
        return scale * jax.random.normal(next(kiter), (1, cout), jnp.float32)

    spfp_linear = {
        # SPFP SharedMLP([in+3, mid, mid]) + outer ReLU, weights split [loc|feat]
        "w1_loc": w(3, mid), "w1_feat": w(in_channels, mid), "b1": b(mid),
        "w2": w(mid, mid), "b2": b(mid),
        # resid_loc: identity-ish init as in the PyTorch __init__ (kept f32)
        "wr_loc": jnp.zeros((3, 2), jnp.float32).at[0, 0].set(1.0)
                                                 .at[1, 1].set(1.0),
        "wr_feat": jnp.zeros((mid, 2), jnp.float32),
        "br": jnp.zeros((1, 2), jnp.float32),
        # linear SharedMLP([pool_ch, feat, feat]); first weight split per map
        "wl1_chunks": tuple(w(c, feat_channels) for c in pool_cs),
        "bl1": b(feat_channels),
        "wl2": w(feat_channels, feat_channels), "bl2": b(feat_channels),
    }

    def gconv(cin, cout):
        # merged GraphConv weights over the [loc | feat] input (3 + cin wide)
        return {"w_rel": w(3 + cin, cout), "b_rel": b(cout),
                "w_root": w(3 + cin, cout)}

    refine = {
        "gc1": gconv(refine_in, mid_r),
        "gc2": gconv(mid_r, mid_r),
        "gc3": gconv(mid_r, out_channels),
        "wl_loc": w(3, 3, jnp.float32),
        "wl_feat": w(out_channels, 3, jnp.float32),
        "b_loc": b(3),
    }
    return {"spfp_linear": spfp_linear, "refine": refine}


# ---------------------------------------------------------------------------
# Full GraphConvDecoder forward
# ---------------------------------------------------------------------------
def graph_conv_decoder_forward(params, x_loc, x_feat, x_to_pool_from):
    B, _, N = x_loc.shape
    loc = jnp.transpose(x_loc, (0, 2, 1))              # (B, N, 3) f32
    feat = jnp.transpose(x_feat, (0, 2, 1))            # (B, N, Cin) f32

    # pool feature maps -> channels-last flats (bf16) + precomputed pixel ids
    fmaps, idxs, map_hw = [], [], []
    for fm in x_to_pool_from:
        _, C, H, W = fm.shape
        fmaps.append(jnp.transpose(fm, (0, 2, 3, 1))
                     .reshape(B, H * W, C).astype(jnp.bfloat16))
        r = jnp.arange(H * W, dtype=jnp.int32)
        idxs.append(jnp.stack([r // W, r % W], axis=0))          # (2, HW) int32
        map_hw.append((H, W))

    # fused SPFP (+ resid_loc + grid_sample + linear); output already is the
    # refine-stage input [loc | x_feat | lin]  (B, N, 3+Cin+featC) bf16.
    cur = spfp_linear_fused(loc, feat, fmaps, idxs, map_hw,
                            params["spfp_linear"])

    # kNN selection computed once (depends only on loc) and reused by all
    # three GraphConv layers.  Keys are passed pre-transposed (lane-dense).
    sq = jnp.sum(loc * loc, axis=-1, keepdims=True)
    locA = jnp.concatenate([-2.0 * loc, jnp.ones_like(sq)], axis=-1)   # (B,N,4)
    locBT = jnp.transpose(jnp.concatenate([loc, sq], axis=-1),
                          (0, 2, 1))                                   # (B,4,N)
    nbr_idx = knn_indices(locA, locBT, k=3)                            # (B,N,3)

    r = params["refine"]
    cur = pcd_graphconv(nbr_idx, cur, r["gc1"])        # (B, N, 3+mid_r)
    cur = pcd_graphconv(nbr_idx, cur, r["gc2"])        # (B, N, 3+mid_r)
    new_feat, new_loc = pcd_graphconv(
        nbr_idx, cur, r["gc3"],
        loc_head=(r["wl_loc"], r["wl_feat"], r["b_loc"]), loc=loc)

    # back to PyTorch NCW layout
    return (jnp.transpose(new_loc, (0, 2, 1)),          # (B, 3, N)
            jnp.transpose(new_feat, (0, 2, 1)))         # (B, out, N)


# ---------------------------------------------------------------------------
if __name__ == "__main__":
    B, N = 2, 16
    in_channels = 8
    feat_channels = 8
    out_channels = 8
    pool_specs = [(6, 8, 8), (10, 4, 4)]                 # (C, H, W)
    pool_cs = [c for c, _, _ in pool_specs]

    key = jax.random.PRNGKey(0)
    k_loc, k_feat, k_par, k_p0, k_p1 = jax.random.split(key, 5)
    x_loc = jax.random.uniform(k_loc, (B, 3, N), jnp.float32, -1.0, 1.0)
    x_feat = jax.random.normal(k_feat, (B, in_channels, N), jnp.float32)
    x_to_pool_from = [
        jax.random.normal(kk, (B, c, h, w), jnp.float32)
        for kk, (c, h, w) in zip([k_p0, k_p1], pool_specs)
    ]

    params = init_params(k_par, in_channels, pool_cs,
                         feat_channels, out_channels)

    fwd = jax.jit(graph_conv_decoder_forward)
    new_loc, new_feat = fwd(params, x_loc, x_feat, x_to_pool_from)
    jax.block_until_ready((new_loc, new_feat))

    assert new_loc.shape == (B, 3, N), new_loc.shape
    assert new_feat.shape == (B, out_channels, N), new_feat.shape
    assert bool(jnp.all(jnp.isfinite(new_loc)))
    assert bool(jnp.all(jnp.isfinite(new_feat)))
    print("KERNEL_OK")
</pallas_src>

<mosaic_0001>
module attributes {stable_mosaic.version = 11 : i64} {
  func.func @_knn_kernel(%arg0: i32, %arg1: i32, %arg2: memref<1x16x4xf32, #tpu.memory_space<vmem>>, %arg3: memref<1x4x16xf32, #tpu.memory_space<vmem>>, %arg4: memref<1x16x3xi32, #tpu.memory_space<vmem>>) attributes {dimension_semantics = [#tpu.dimension_semantics<parallel>, #tpu.dimension_semantics<parallel>], iteration_bounds = array<i64: 2, 1>, scalar_prefetch = 0 : i64, scratch_operands = 0 : i64, tpu.core_type = #tpu.core_type<tc>, window_params = [{transform_indices = @transform_0, window_bounds = array<i64: 1, 16, 4>}, {transform_indices = @transform_1, window_bounds = array<i64: 1, 4, 16>}, {transform_indices = @transform_2, window_bounds = array<i64: 1, 16, 3>}]} {
    %c0 = arith.constant 0 : index
    %c0_0 = arith.constant 0 : index
    %c0_1 = arith.constant 0 : index
    %0 = vector.load %arg2[%c0, %c0_0, %c0_1] : memref<1x16x4xf32, #tpu.memory_space<vmem>>, vector<1x16x4xf32>
    %1 = vector.shape_cast %0 : vector<1x16x4xf32> to vector<16x4xf32>
    %c0_2 = arith.constant 0 : index
    %c0_3 = arith.constant 0 : index
    %c0_4 = arith.constant 0 : index
    %2 = vector.load %arg3[%c0_2, %c0_3, %c0_4] : memref<1x4x16xf32, #tpu.memory_space<vmem>>, vector<1x4x16xf32>
    %3 = vector.shape_cast %2 : vector<1x4x16xf32> to vector<4x16xf32>
    %cst = arith.constant dense<0.000000e+00> : vector<16x16xf32>
    %4 = tpu.matmul %1, %3, %cst {dimension_numbers = #tpu.dot_dimension_numbers<[1], [0], [0], [1], [0, 0, 1, 1], [], []>} : vector<16x4xf32>, vector<4x16xf32>, vector<16x16xf32> -> vector<16x16xf32>
    %c16_i32 = arith.constant 16 : i32
    %5 = arith.muli %arg1, %c16_i32 : i32
    %6 = tpu.iota {dimensions = array<i32: 0>} : vector<16x1xi32>
    %7 = vector.broadcast %5 : i32 to vector<16x1xi32>
    %8 = arith.addi %7, %6 : vector<16x1xi32>
    %9 = tpu.iota {dimensions = array<i32: 1>} : vector<1x16xi32>
    %10 = arith.sitofp %9 : vector<1x16xi32> to vector<1x16xf32>
    %11 = vector.broadcast %8 : vector<16x1xi32> to vector<16x16xi32>
    %12 = vector.broadcast %9 : vector<1x16xi32> to vector<16x16xi32>
    %13 = arith.cmpi eq, %11, %12 : vector<16x16xi32>
    %cst_5 = arith.constant 1.000000e+30 : f32
    %14 = vector.broadcast %cst_5 : f32 to vector<16x16xf32>
    %15 = arith.select %13, %14, %4 : vector<16x16xi1>, vector<16x16xf32>
    %cst_6 = arith.constant dense<0x7F800000> : vector<16xf32>
    %16 = vector.multi_reduction <minimumf>, %15, %cst_6 [1] : vector<16x16xf32> to vector<16xf32>
    %17 = vector.shape_cast %16 : vector<16xf32> to vector<16x1xf32>
    %18 = vector.broadcast %17 : vector<16x1xf32> to vector<16x16xf32>
    %19 = arith.cmpf ole, %15, %18 : vector<16x16xf32>
    %cst_7 = arith.constant 1.600000e+01 : f32
    %20 = vector.shape_cast %10 : vector<1x16xf32> to vector<1x16xf32>
    %21 = vector.broadcast %20 : vector<1x16xf32> to vector<16x16xf32>
    %22 = vector.broadcast %cst_7 : f32 to vector<16x16xf32>
    %23 = arith.select %19, %21, %22 : vector<16x16xi1>, vector<16x16xf32>
    %cst_8 = arith.constant dense<0x7F800000> : vector<16xf32>
    %24 = vector.multi_reduction <minimumf>, %23, %cst_8 [1] : vector<16x16xf32> to vector<16xf32>
    %25 = vector.shape_cast %24 : vector<16xf32> to vector<16x1xf32>
    %26 = arith.fptosi %25 : vector<16x1xf32> to vector<16x1xi32>
    %27 = vector.broadcast %10 : vector<1x16xf32> to vector<16x16xf32>
    %28 = vector.broadcast %25 : vector<16x1xf32> to vector<16x16xf32>
    %29 = arith.cmpf oeq, %27, %28 : vector<16x16xf32>
    %cst_9 = arith.constant 1.000000e+30 : f32
    %30 = vector.broadcast %cst_9 : f32 to vector<16x16xf32>
    %31 = arith.select %29, %30, %15 : vector<16x16xi1>, vector<16x16xf32>
    %cst_10 = arith.constant dense<0x7F800000> : vector<16xf32>
    %32 = vector.multi_reduction <minimumf>, %31, %cst_10 [1] : vector<16x16xf32> to vector<16xf32>
    %33 = vector.shape_cast %32 : vector<16xf32> to vector<16x1xf32>
    %34 = vector.broadcast %33 : vector<16x1xf32> to vector<16x16xf32>
    %35 = arith.cmpf ole, %31, %34 : vector<16x16xf32>
    %cst_11 = arith.constant 1.600000e+01 : f32
    %36 = vector.shape_cast %10 : vector<1x16xf32> to vector<1x16xf32>
    %37 = vector.broadcast %36 : vector<1x16xf32> to vector<16x16xf32>
    %38 = vector.broadcast %cst_11 : f32 to vector<16x16xf32>
    %39 = arith.select %35, %37, %38 : vector<16x16xi1>, vector<16x16xf32>
    %cst_12 = arith.constant dense<0x7F800000> : vector<16xf32>
    %40 = vector.multi_reduction <minimumf>, %39, %cst_12 [1] : vector<16x16xf32> to vector<16xf32>
    %41 = vector.shape_cast %40 : vector<16xf32> to vector<16x1xf32>
    %42 = arith.fptosi %41 : vector<16x1xf32> to vector<16x1xi32>
    %43 = vector.broadcast %10 : vector<1x16xf32> to vector<16x16xf32>
    %44 = vector.broadcast %41 : vector<16x1xf32> to vector<16x16xf32>
    %45 = arith.cmpf oeq, %43, %44 : vector<16x16xf32>
    %cst_13 = arith.constant 1.000000e+30 : f32
    %46 = vector.broadcast %cst_13 : f32 to vector<16x16xf32>
    %47 = arith.select %45, %46, %31 : vector<16x16xi1>, vector<16x16xf32>
    %cst_14 = arith.constant dense<0x7F800000> : vector<16xf32>
    %48 = vector.multi_reduction <minimumf>, %47, %cst_14 [1] : vector<16x16xf32> to vector<16xf32>
    %49 = vector.shape_cast %48 : vector<16xf32> to vector<16x1xf32>
    %50 = vector.broadcast %49 : vector<16x1xf32> to vector<16x16xf32>
    %51 = arith.cmpf ole, %47, %50 : vector<16x16xf32>
    %cst_15 = arith.constant 1.600000e+01 : f32
    %52 = vector.shape_cast %10 : vector<1x16xf32> to vector<1x16xf32>
    %53 = vector.broadcast %52 : vector<1x16xf32> to vector<16x16xf32>
    %54 = vector.broadcast %cst_15 : f32 to vector<16x16xf32>
    %55 = arith.select %51, %53, %54 : vector<16x16xi1>, vector<16x16xf32>
    %cst_16 = arith.constant dense<0x7F800000> : vector<16xf32>
    %56 = vector.multi_reduction <minimumf>, %55, %cst_16 [1] : vector<16x16xf32> to vector<16xf32>
    %57 = vector.shape_cast %56 : vector<16xf32> to vector<16x1xf32>
    %58 = arith.fptosi %57 : vector<16x1xf32> to vector<16x1xi32>
    %59 = tpu.concatenate %26, %42, %58 in 1 : vector<16x1xi32>, vector<16x1xi32>, vector<16x1xi32> -> vector<16x3xi32>
    %c0_17 = arith.constant 0 : index
    %c0_18 = arith.constant 0 : index
    %c0_19 = arith.constant 0 : index
    %60 = vector.load %arg4[%c0_17, %c0_18, %c0_19] : memref<1x16x3xi32, #tpu.memory_space<vmem>>, vector<1x16x3xi32>
    %61 = vector.shape_cast %60 : vector<1x16x3xi32> to vector<16x3xi32>
    %62 = vector.shape_cast %59 : vector<16x3xi32> to vector<1x16x3xi32>
    tpu.vector_store %arg4[%c0_17, %c0_18, %c0_19], %62 {strides = array<i32>} : memref<1x16x3xi32, #tpu.memory_space<vmem>>, vector<1x16x3xi32>,
    return
  }
  func.func @transform_0(%arg0: i32, %arg1: i32) -> (i32, i32, i32) {
    %c0_i32 = arith.constant 0 : i32
    %c0_i32_0 = arith.constant 0 : i32
    return %arg0, %arg1, %c0_i32 : i32, i32, i32
  }
  func.func @transform_1(%arg0: i32, %arg1: i32) -> (i32, i32, i32) {
    %c0_i32 = arith.constant 0 : i32
    %c0_i32_0 = arith.constant 0 : i32
    %c0_i32_1 = arith.constant 0 : i32
    return %arg0, %c0_i32, %c0_i32_0 : i32, i32, i32
  }
  func.func @transform_2(%arg0: i32, %arg1: i32) -> (i32, i32, i32) {
    %c0_i32 = arith.constant 0 : i32
    %c0_i32_0 = arith.constant 0 : i32
    return %arg0, %arg1, %c0_i32 : i32, i32, i32
  }
}

module attributes {stable_mosaic.version = 11 : i64} {
  func.func @_gconv_kernel(%arg0: i32, %arg1: i32, %arg2: memref<1x16x3xi32, #tpu.memory_space<vmem>>, %arg3: memref<1x16x19xbf16, #tpu.memory_space<vmem>>, %arg4: memref<1x16x19xbf16, #tpu.memory_space<vmem>>, %arg5: memref<19x12xbf16, #tpu.memory_space<vmem>>, %arg6: memref<1x12xf32, #tpu.memory_space<vmem>>, %arg7: memref<19x12xbf16, #tpu.memory_space<vmem>>, %arg8: memref<1x16x15xbf16, #tpu.memory_space<vmem>>) attributes {dimension_semantics = [#tpu.dimension_semantics<parallel>, #tpu.dimension_semantics<parallel>], iteration_bounds = array<i64: 2, 1>, scalar_prefetch = 0 : i64, scratch_operands = 0 : i64, tpu.core_type = #tpu.core_type<tc>, window_params = [{transform_indices = @transform_0, window_bounds = array<i64: 1, 16, 3>}, {transform_indices = @transform_1, window_bounds = array<i64: 1, 16, 19>}, {transform_indices = @transform_2, window_bounds = array<i64: 1, 16, 19>}, {pipeline_mode = #tpu.pipeline_mode<synchronous>, transform_indices = @transform_3, window_bounds = array<i64: 19, 12>}, {pipeline_mode = #tpu.pipeline_mode<synchronous>, transform_indices = @transform_4, window_bounds = array<i64: 1, 12>}, {pipeline_mode = #tpu.pipeline_mode<synchronous>, transform_indices = @transform_5, window_bounds = array<i64: 19, 12>}, {transform_indices = @transform_6, window_bounds = array<i64: 1, 16, 15>}]} {
    %c0 = arith.constant 0 : index
    %c0_0 = arith.constant 0 : index
    %c0_1 = arith.constant 0 : index
    %0 = vector.load %arg2[%c0, %c0_0, %c0_1] : memref<1x16x3xi32, #tpu.memory_space<vmem>>, vector<1x16x3xi32>
    %1 = vector.shape_cast %0 : vector<1x16x3xi32> to vector<16x3xi32>
    %c0_2 = arith.constant 0 : index
    %c0_3 = arith.constant 0 : index
    %c0_4 = arith.constant 0 : index
    %2 = vector.load %arg3[%c0_2, %c0_3, %c0_4] : memref<1x16x19xbf16, #tpu.memory_space<vmem>>, vector<1x16x19xbf16>
    %3 = vector.shape_cast %2 : vector<1x16x19xbf16> to vector<16x19xbf16>
    %c0_5 = arith.constant 0 : index
    %c0_6 = arith.constant 0 : index
    %c0_7 = arith.constant 0 : index
    %4 = vector.load %arg4[%c0_5, %c0_6, %c0_7] : memref<1x16x19xbf16, #tpu.memory_space<vmem>>, vector<1x16x19xbf16>
    %5 = vector.shape_cast %4 : vector<1x16x19xbf16> to vector<16x19xbf16>
    %6 = tpu.iota {dimensions = array<i32: 1>} : vector<1x16xi32>
    %7 = vector.extract_strided_slice %1 {offsets = [0, 0], sizes = [16, 1], strides = [1, 1]} : vector<16x3xi32> to vector<16x1xi32>
    %8 = vector.broadcast %6 : vector<1x16xi32> to vector<16x16xi32>
    %9 = vector.broadcast %7 : vector<16x1xi32> to vector<16x16xi32>
    %10 = arith.cmpi eq, %8, %9 : vector<16x16xi32>
    %11 = vector.extract_strided_slice %1 {offsets = [0, 1], sizes = [16, 1], strides = [1, 1]} : vector<16x3xi32> to vector<16x1xi32>
    %12 = vector.broadcast %6 : vector<1x16xi32> to vector<16x16xi32>
    %13 = vector.broadcast %11 : vector<16x1xi32> to vector<16x16xi32>
    %14 = arith.cmpi eq, %12, %13 : vector<16x16xi32>
    %15 = arith.ori %10, %14 : vector<16x16xi1>
    %16 = vector.extract_strided_slice %1 {offsets = [0, 2], sizes = [16, 1], strides = [1, 1]} : vector<16x3xi32> to vector<16x1xi32>
    %17 = vector.broadcast %6 : vector<1x16xi32> to vector<16x16xi32>
    %18 = vector.broadcast %16 : vector<16x1xi32> to vector<16x16xi32>
    %19 = arith.cmpi eq, %17, %18 : vector<16x16xi32>
    %20 = arith.ori %15, %19 : vector<16x16xi1>
    %21 = arith.extui %20 : vector<16x16xi1> to vector<16x16xi32>
    %22 = arith.sitofp %21 : vector<16x16xi32> to vector<16x16xf32>
    %23 = arith.truncf %22 : vector<16x16xf32> to vector<16x16xbf16>
    %cst = arith.constant dense<0.000000e+00> : vector<16x19xf32>
    %24 = tpu.matmul %23, %3, %cst {dimension_numbers = #tpu.dot_dimension_numbers<[1], [0], [0], [1], [0, 0, 1, 1], [], []>} : vector<16x16xbf16>, vector<16x19xbf16>, vector<16x19xf32> -> vector<16x19xf32>
    %25 = arith.truncf %24 : vector<16x19xf32> to vector<16x19xbf16>
    %c0_8 = arith.constant 0 : index
    %c0_9 = arith.constant 0 : index
    %26 = vector.load %arg5[%c0_8, %c0_9] : memref<19x12xbf16, #tpu.memory_space<vmem>>, vector<19x12xbf16>
    %cst_10 = arith.constant dense<0.000000e+00> : vector<16x12xf32>
    %27 = tpu.matmul %25, %26, %cst_10 {dimension_numbers = #tpu.dot_dimension_numbers<[1], [0], [0], [1], [0, 0, 1, 1], [], []>} : vector<16x19xbf16>, vector<19x12xbf16>, vector<16x12xf32> -> vector<16x12xf32>
    %c0_11 = arith.constant 0 : index
    %c0_12 = arith.constant 0 : index
    %28 = vector.load %arg6[%c0_11, %c0_12] : memref<1x12xf32, #tpu.memory_space<vmem>>, vector<1x12xf32>
    %29 = vector.broadcast %28 : vector<1x12xf32> to vector<16x12xf32>
    %30 = arith.addf %27, %29 : vector<16x12xf32>
    %c0_13 = arith.constant 0 : index
    %c0_14 = arith.constant 0 : index
    %31 = vector.load %arg7[%c0_13, %c0_14] : memref<19x12xbf16, #tpu.memory_space<vmem>>, vector<19x12xbf16>
    %cst_15 = arith.constant dense<0.000000e+00> : vector<16x12xf32>
    %32 = tpu.matmul %5, %31, %cst_15 {dimension_numbers = #tpu.dot_dimension_numbers<[1], [0], [0], [1], [0, 0, 1, 1], [], []>} : vector<16x19xbf16>, vector<19x12xbf16>, vector<16x12xf32> -> vector<16x12xf32>
    %33 = arith.addf %30, %32 : vector<16x12xf32>
    %cst_16 = arith.constant 0.000000e+00 : f32
    %34 = vector.broadcast %cst_16 : f32 to vector<16x12xf32>
    %35 = arith.maximumf %33, %34 : vector<16x12xf32>
    %36 = vector.extract_strided_slice %5 {offsets = [0, 0], sizes = [16, 3], strides = [1, 1]} : vector<16x19xbf16> to vector<16x3xbf16>
    %37 = arith.truncf %35 : vector<16x12xf32> to vector<16x12xbf16>
    %38 = tpu.concatenate %36, %37 in 1 : vector<16x3xbf16>, vector<16x12xbf16> -> vector<16x15xbf16>
    %c0_17 = arith.constant 0 : index
    %c0_18 = arith.constant 0 : index
    %c0_19 = arith.constant 0 : index
    %39 = vector.load %arg8[%c0_17, %c0_18, %c0_19] : memref<1x16x15xbf16, #tpu.memory_space<vmem>>, vector<1x16x15xbf16>
    %40 = vector.shape_cast %39 : vector<1x16x15xbf16> to vector<16x15xbf16>
    %41 = vector.shape_cast %38 : vector<16x15xbf16> to vector<1x16x15xbf16>
    tpu.vector_store %arg8[%c0_17, %c0_18, %c0_19], %41 {strides = array<i32>} : memref<1x16x15xbf16, #tpu.memory_space<vmem>>, vector<1x16x15xbf16>,
    return
  }
  func.func @transform_0(%arg0: i32, %arg1: i32) -> (i32, i32, i32) {
    %c0_i32 = arith.constant 0 : i32
    %c0_i32_0 = arith.constant 0 : i32
    return %arg0, %arg1, %c0_i32 : i32, i32, i32
  }
  func.func @transform_1(%arg0: i32, %arg1: i32) -> (i32, i32, i32) {
    %c0_i32 = arith.constant 0 : i32
    %c0_i32_0 = arith.constant 0 : i32
    %c0_i32_1 = arith.constant 0 : i32
    return %arg0, %c0_i32, %c0_i32_0 : i32, i32, i32
  }
  func.func @transform_2(%arg0: i32, %arg1: i32) -> (i32, i32, i32) {
    %c0_i32 = arith.constant 0 : i32
    %c0_i32_0 = arith.constant 0 : i32
    return %arg0, %arg1, %c0_i32 : i32, i32, i32
  }
  func.func @transform_3(%arg0: i32, %arg1: i32) -> (i32, i32) {
    %c0_i32 = arith.constant 0 : i32
    %c0_i32_0 = arith.constant 0 : i32
    %c0_i32_1 = arith.constant 0 : i32
    return %c0_i32, %c0_i32_0 : i32, i32
  }
  func.func @transform_4(%arg0: i32, %arg1: i32) -> (i32, i32) {
    %c0_i32 = arith.constant 0 : i32
    %c0_i32_0 = arith.constant 0 : i32
    %c0_i32_1 = arith.constant 0 : i32
    return %c0_i32, %c0_i32_0 : i32, i32
  }
  func.func @transform_5(%arg0: i32, %arg1: i32) -> (i32, i32) {
    %c0_i32 = arith.constant 0 : i32
    %c0_i32_0 = arith.constant 0 : i32
    %c0_i32_1 = arith.constant 0 : i32
    return %c0_i32, %c0_i32_0 : i32, i32
  }
  func.func @transform_6(%arg0: i32, %arg1: i32) -> (i32, i32, i32) {
    %c0_i32 = arith.constant 0 : i32
    %c0_i32_0 = arith.constant 0 : i32
    return %arg0, %arg1, %c0_i32 : i32, i32, i32
  }
}

module attributes {stable_mosaic.version = 11 : i64} {
  func.func @_spfp_linear_kernel(%arg0: i32, %arg1: i32, %arg2: memref<1x16x3xf32, #tpu.memory_space<vmem>>, %arg3: memref<1x16x8xf32, #tpu.memory_space<vmem>>, %arg4: memref<1x64x6xbf16, #tpu.memory_space<vmem>>, %arg5: memref<1x16x10xbf16, #tpu.memory_space<vmem>>, %arg6: memref<2x64xi32, #tpu.memory_space<vmem>>, %arg7: memref<2x16xi32, #tpu.memory_space<vmem>>, %arg8: memref<3x4xbf16, #tpu.memory_space<vmem>>, %arg9: memref<8x4xbf16, #tpu.memory_space<vmem>>, %arg10: memref<1x4xf32, #tpu.memory_space<vmem>>, %arg11: memref<4x4xbf16, #tpu.memory_space<vmem>>, %arg12: memref<1x4xf32, #tpu.memory_space<vmem>>, %arg13: memref<3x2xf32, #tpu.memory_space<vmem>>, %arg14: memref<4x2xf32, #tpu.memory_space<vmem>>, %arg15: memref<1x2xf32, #tpu.memory_space<vmem>>, %arg16: memref<6x8xbf16, #tpu.memory_space<vmem>>, %arg17: memref<10x8xbf16, #tpu.memory_space<vmem>>, %arg18: memref<1x8xf32, #tpu.memory_space<vmem>>, %arg19: memref<8x8xbf16, #tpu.memory_space<vmem>>, %arg20: memref<1x8xf32, #tpu.memory_space<vmem>>, %arg21: memref<1x16x19xbf16, #tpu.memory_space<vmem>>) attributes {dimension_semantics = [#tpu.dimension_semantics<parallel>, #tpu.dimension_semantics<parallel>], iteration_bounds = array<i64: 2, 1>, scalar_prefetch = 0 : i64, scratch_operands = 0 : i64, tpu.core_type = #tpu.core_type<tc>, window_params = [{transform_indices = @transform_0, window_bounds = array<i64: 1, 16, 3>}, {transform_indices = @transform_1, window_bounds = array<i64: 1, 16, 8>}, {transform_indices = @transform_2, window_bounds = array<i64: 1, 64, 6>}, {transform_indices = @transform_3, window_bounds = array<i64: 1, 16, 10>}, {pipeline_mode = #tpu.pipeline_mode<synchronous>, transform_indices = @transform_4, window_bounds = array<i64: 2, 64>}, {pipeline_mode = #tpu.pipeline_mode<synchronous>, transform_indices = @transform_5, window_bounds = array<i64: 2, 16>}, {pipeline_mode = #tpu.pipeline_mode<synchronous>, transform_indices = @transform_6, window_bounds = array<i64: 3, 4>}, {pipeline_mode = #tpu.pipeline_mode<synchronous>, transform_indices = @transform_7, window_bounds = array<i64: 8, 4>}, {pipeline_mode = #tpu.pipeline_mode<synchronous>, transform_indices = @transform_8, window_bounds = array<i64: 1, 4>}, {pipeline_mode = #tpu.pipeline_mode<synchronous>, transform_indices = @transform_9, window_bounds = array<i64: 4, 4>}, {pipeline_mode = #tpu.pipeline_mode<synchronous>, transform_indices = @transform_10, window_bounds = array<i64: 1, 4>}, {pipeline_mode = #tpu.pipeline_mode<synchronous>, transform_indices = @transform_11, window_bounds = array<i64: 3, 2>}, {pipeline_mode = #tpu.pipeline_mode<synchronous>, transform_indices = @transform_12, window_bounds = array<i64: 4, 2>}, {pipeline_mode = #tpu.pipeline_mode<synchronous>, transform_indices = @transform_13, window_bounds = array<i64: 1, 2>}, {pipeline_mode = #tpu.pipeline_mode<synchronous>, transform_indices = @transform_14, window_bounds = array<i64: 6, 8>}, {pipeline_mode = #tpu.pipeline_mode<synchronous>, transform_indices = @transform_15, window_bounds = array<i64: 10, 8>}, {pipeline_mode = #tpu.pipeline_mode<synchronous>, transform_indices = @transform_16, window_bounds = array<i64: 1, 8>}, {pipeline_mode = #tpu.pipeline_mode<synchronous>, transform_indices = @transform_17, window_bounds = array<i64: 8, 8>}, {pipeline_mode = #tpu.pipeline_mode<synchronous>, transform_indices = @transform_18, window_bounds = array<i64: 1, 8>}, {transform_indices = @transform_19, window_bounds = array<i64: 1, 16, 19>}]} {
    %c0 = arith.constant 0 : index
    %c0_0 = arith.constant 0 : index
    %c0_1 = arith.constant 0 : index
    %0 = vector.load %arg2[%c0, %c0_0, %c0_1] : memref<1x16x3xf32, #tpu.memory_space<vmem>>, vector<1x16x3xf32>
    %1 = vector.shape_cast %0 : vector<1x16x3xf32> to vector<16x3xf32>
    %c0_2 = arith.constant 0 : index
    %c0_3 = arith.constant 0 : index
    %c0_4 = arith.constant 0 : index
    %2 = vector.load %arg3[%c0_2, %c0_3, %c0_4] : memref<1x16x8xf32, #tpu.memory_space<vmem>>, vector<1x16x8xf32>
    %3 = vector.shape_cast %2 : vector<1x16x8xf32> to vector<16x8xf32>
    %4 = arith.truncf %1 : vector<16x3xf32> to vector<16x3xbf16>
    %5 = arith.truncf %3 : vector<16x8xf32> to vector<16x8xbf16>
    %c0_5 = arith.constant 0 : index
    %c0_6 = arith.constant 0 : index
    %6 = vector.load %arg8[%c0_5, %c0_6] : memref<3x4xbf16, #tpu.memory_space<vmem>>, vector<3x4xbf16>
    %cst = arith.constant dense<0.000000e+00> : vector<16x4xf32>
    %7 = tpu.matmul %4, %6, %cst {dimension_numbers = #tpu.dot_dimension_numbers<[1], [0], [0], [1], [0, 0, 1, 1], [], []>} : vector<16x3xbf16>, vector<3x4xbf16>, vector<16x4xf32> -> vector<16x4xf32>
    %c0_7 = arith.constant 0 : index
    %c0_8 = arith.constant 0 : index
    %8 = vector.load %arg9[%c0_7, %c0_8] : memref<8x4xbf16, #tpu.memory_space<vmem>>, vector<8x4xbf16>
    %cst_9 = arith.constant dense<0.000000e+00> : vector<16x4xf32>
    %9 = tpu.matmul %5, %8, %cst_9 {dimension_numbers = #tpu.dot_dimension_numbers<[1], [0], [0], [1], [0, 0, 1, 1], [], []>} : vector<16x8xbf16>, vector<8x4xbf16>, vector<16x4xf32> -> vector<16x4xf32>
    %10 = arith.addf %7, %9 : vector<16x4xf32>
    %c0_10 = arith.constant 0 : index
    %c0_11 = arith.constant 0 : index
    %11 = vector.load %arg10[%c0_10, %c0_11] : memref<1x4xf32, #tpu.memory_space<vmem>>, vector<1x4xf32>
    %12 = vector.broadcast %11 : vector<1x4xf32> to vector<16x4xf32>
    %13 = arith.addf %10, %12 : vector<16x4xf32>
    %cst_12 = arith.constant 0.000000e+00 : f32
    %14 = vector.broadcast %cst_12 : f32 to vector<16x4xf32>
    %15 = arith.maximumf %13, %14 : vector<16x4xf32>
    %16 = arith.truncf %15 : vector<16x4xf32> to vector<16x4xbf16>
    %c0_13 = arith.constant 0 : index
    %c0_14 = arith.constant 0 : index
    %17 = vector.load %arg11[%c0_13, %c0_14] : memref<4x4xbf16, #tpu.memory_space<vmem>>, vector<4x4xbf16>
    %cst_15 = arith.constant dense<0.000000e+00> : vector<16x4xf32>
    %18 = tpu.matmul %16, %17, %cst_15 {dimension_numbers = #tpu.dot_dimension_numbers<[1], [0], [0], [1], [0, 0, 1, 1], [], []>} : vector<16x4xbf16>, vector<4x4xbf16>, vector<16x4xf32> -> vector<16x4xf32>
    %c0_16 = arith.constant 0 : index
    %c0_17 = arith.constant 0 : index
    %19 = vector.load %arg12[%c0_16, %c0_17] : memref<1x4xf32, #tpu.memory_space<vmem>>, vector<1x4xf32>
    %20 = vector.broadcast %19 : vector<1x4xf32> to vector<16x4xf32>
    %21 = arith.addf %18, %20 : vector<16x4xf32>
    %cst_18 = arith.constant 0.000000e+00 : f32
    %22 = vector.broadcast %cst_18 : f32 to vector<16x4xf32>
    %23 = arith.maximumf %21, %22 : vector<16x4xf32>
    %c0_19 = arith.constant 0 : index
    %c0_20 = arith.constant 0 : index
    %24 = vector.load %arg13[%c0_19, %c0_20] : memref<3x2xf32, #tpu.memory_space<vmem>>, vector<3x2xf32>
    %cst_21 = arith.constant dense<0.000000e+00> : vector<16x2xf32>
    %25 = tpu.matmul %1, %24, %cst_21 {dimension_numbers = #tpu.dot_dimension_numbers<[1], [0], [0], [1], [0, 0, 1, 1], [], []>} : vector<16x3xf32>, vector<3x2xf32>, vector<16x2xf32> -> vector<16x2xf32>
    %c0_22 = arith.constant 0 : index
    %c0_23 = arith.constant 0 : index
    %26 = vector.load %arg14[%c0_22, %c0_23] : memref<4x2xf32, #tpu.memory_space<vmem>>, vector<4x2xf32>
    %cst_24 = arith.constant dense<0.000000e+00> : vector<16x2xf32>
    %27 = tpu.matmul %23, %26, %cst_24 {dimension_numbers = #tpu.dot_dimension_numbers<[1], [0], [0], [1], [0, 0, 1, 1], [], []>} : vector<16x4xf32>, vector<4x2xf32>, vector<16x2xf32> -> vector<16x2xf32>
    %28 = arith.addf %25, %27 : vector<16x2xf32>
    %c0_25 = arith.constant 0 : index
    %c0_26 = arith.constant 0 : index
    %29 = vector.load %arg15[%c0_25, %c0_26] : memref<1x2xf32, #tpu.memory_space<vmem>>, vector<1x2xf32>
    %30 = vector.broadcast %29 : vector<1x2xf32> to vector<16x2xf32>
    %31 = arith.addf %28, %30 : vector<16x2xf32>
    %32 = vector.extract_strided_slice %31 {offsets = [0, 0], sizes = [16, 1], strides = [1, 1]} : vector<16x2xf32> to vector<16x1xf32>
    %33 = vector.extract_strided_slice %31 {offsets = [0, 1], sizes = [16, 1], strides = [1, 1]} : vector<16x2xf32> to vector<16x1xf32>
    %c0_27 = arith.constant 0 : index
    %c0_28 = arith.constant 0 : index
    %34 = vector.load %arg18[%c0_27, %c0_28] : memref<1x8xf32, #tpu.memory_space<vmem>>, vector<1x8xf32>
    %c0_29 = arith.constant 0 : index
    %c0_30 = arith.constant 0 : index
    %c0_31 = arith.constant 0 : index
    %35 = vector.load %arg4[%c0_29, %c0_30, %c0_31] : memref<1x64x6xbf16, #tpu.memory_space<vmem>>, vector<1x64x6xbf16>
    %36 = vector.shape_cast %35 : vector<1x64x6xbf16> to vector<64x6xbf16>
    %c0_32 = arith.constant 0 : index
    %c0_33 = arith.constant 0 : index
    %37 = vector.load %arg6[%c0_32, %c0_33] : memref<2x64xi32, #tpu.memory_space<vmem>>, vector<1x64xi32>
    %c1 = arith.constant 1 : index
    %c0_34 = arith.constant 0 : index
    %38 = vector.load %arg6[%c1, %c0_34] : memref<2x64xi32, #tpu.memory_space<vmem>>, vector<1x64xi32>
    %cst_35 = arith.constant 1.000000e+00 : f32
    %39 = vector.broadcast %cst_35 : f32 to vector<16x1xf32>
    %40 = arith.addf %32, %39 : vector<16x1xf32>
    %cst_36 = arith.constant 4.000000e+00 : f32
    %41 = vector.broadcast %cst_36 : f32 to vector<16x1xf32>
    %42 = arith.mulf %40, %41 : vector<16x1xf32>
    %cst_37 = arith.constant 5.000000e-01 : f32
    %43 = vector.broadcast %cst_37 : f32 to vector<16x1xf32>
    %44 = arith.subf %42, %43 : vector<16x1xf32>
    %cst_38 = arith.constant 0.000000e+00 : f32
    %cst_39 = arith.constant 7.000000e+00 : f32
    %45 = vector.broadcast %cst_38 : f32 to vector<16x1xf32>
    %46 = arith.maximumf %45, %44 : vector<16x1xf32>
    %47 = vector.broadcast %cst_39 : f32 to vector<16x1xf32>
    %48 = arith.minimumf %47, %46 : vector<16x1xf32>
    %cst_40 = arith.constant 1.000000e+00 : f32
    %49 = vector.broadcast %cst_40 : f32 to vector<16x1xf32>
    %50 = arith.addf %33, %49 : vector<16x1xf32>
    %cst_41 = arith.constant 4.000000e+00 : f32
    %51 = vector.broadcast %cst_41 : f32 to vector<16x1xf32>
    %52 = arith.mulf %50, %51 : vector<16x1xf32>
    %cst_42 = arith.constant 5.000000e-01 : f32
    %53 = vector.broadcast %cst_42 : f32 to vector<16x1xf32>
    %54 = arith.subf %52, %53 : vector<16x1xf32>
    %cst_43 = arith.constant 0.000000e+00 : f32
    %cst_44 = arith.constant 7.000000e+00 : f32
    %55 = vector.broadcast %cst_43 : f32 to vector<16x1xf32>
    %56 = arith.maximumf %55, %54 : vector<16x1xf32>
    %57 = vector.broadcast %cst_44 : f32 to vector<16x1xf32>
    %58 = arith.minimumf %57, %56 : vector<16x1xf32>
    %59 = math.floor %48 : vector<16x1xf32>
    %60 = math.floor %58 : vector<16x1xf32>
    %61 = arith.subf %48, %59 : vector<16x1xf32>
    %62 = arith.subf %58, %60 : vector<16x1xf32>
    %63 = arith.fptosi %59 : vector<16x1xf32> to vector<16x1xi32>
    %64 = arith.fptosi %60 : vector<16x1xf32> to vector<16x1xi32>
    %c1_i32 = arith.constant 1 : i32
    %65 = vector.broadcast %c1_i32 : i32 to vector<16x1xi32>
    %66 = arith.addi %63, %65 : vector<16x1xi32>
    %c7_i32 = arith.constant 7 : i32
    %67 = vector.broadcast %c7_i32 : i32 to vector<16x1xi32>
    %68 = arith.minsi %66, %67 : vector<16x1xi32>
    %c1_i32_45 = arith.constant 1 : i32
    %69 = vector.broadcast %c1_i32_45 : i32 to vector<16x1xi32>
    %70 = arith.addi %64, %69 : vector<16x1xi32>
    %c7_i32_46 = arith.constant 7 : i32
    %71 = vector.broadcast %c7_i32_46 : i32 to vector<16x1xi32>
    %72 = arith.minsi %70, %71 : vector<16x1xi32>
    %73 = vector.broadcast %37 : vector<1x64xi32> to vector<16x64xi32>
    %74 = vector.broadcast %64 : vector<16x1xi32> to vector<16x64xi32>
    %75 = arith.cmpi eq, %73, %74 : vector<16x64xi32>
    %cst_47 = arith.constant 1.000000e+00 : f32
    %76 = vector.broadcast %cst_47 : f32 to vector<16x1xf32>
    %77 = arith.subf %76, %62 : vector<16x1xf32>
    %cst_48 = arith.constant 0.000000e+00 : f32
    %78 = vector.shape_cast %77 : vector<16x1xf32> to vector<16x1xf32>
    %79 = vector.broadcast %78 : vector<16x1xf32> to vector<16x64xf32>
    %80 = vector.broadcast %cst_48 : f32 to vector<16x64xf32>
    %81 = arith.select %75, %79, %80 : vector<16x64xi1>, vector<16x64xf32>
    %82 = vector.broadcast %37 : vector<1x64xi32> to vector<16x64xi32>
    %83 = vector.broadcast %72 : vector<16x1xi32> to vector<16x64xi32>
    %84 = arith.cmpi eq, %82, %83 : vector<16x64xi32>
    %cst_49 = arith.constant 0.000000e+00 : f32
    %85 = vector.shape_cast %62 : vector<16x1xf32> to vector<16x1xf32>
    %86 = vector.broadcast %85 : vector<16x1xf32> to vector<16x64xf32>
    %87 = vector.broadcast %cst_49 : f32 to vector<16x64xf32>
    %88 = arith.select %84, %86, %87 : vector<16x64xi1>, vector<16x64xf32>
    %89 = arith.addf %81, %88 : vector<16x64xf32>
    %90 = vector.broadcast %38 : vector<1x64xi32> to vector<16x64xi32>
    %91 = vector.broadcast %63 : vector<16x1xi32> to vector<16x64xi32>
    %92 = arith.cmpi eq, %90, %91 : vector<16x64xi32>
    %cst_50 = arith.constant 1.000000e+00 : f32
    %93 = vector.broadcast %cst_50 : f32 to vector<16x1xf32>
    %94 = arith.subf %93, %61 : vector<16x1xf32>
    %cst_51 = arith.constant 0.000000e+00 : f32
    %95 = vector.shape_cast %94 : vector<16x1xf32> to vector<16x1xf32>
    %96 = vector.broadcast %95 : vector<16x1xf32> to vector<16x64xf32>
    %97 = vector.broadcast %cst_51 : f32 to vector<16x64xf32>
    %98 = arith.select %92, %96, %97 : vector<16x64xi1>, vector<16x64xf32>
    %99 = vector.broadcast %38 : vector<1x64xi32> to vector<16x64xi32>
    %100 = vector.broadcast %68 : vector<16x1xi32> to vector<16x64xi32>
    %101 = arith.cmpi eq, %99, %100 : vector<16x64xi32>
    %cst_52 = arith.constant 0.000000e+00 : f32
    %102 = vector.shape_cast %61 : vector<16x1xf32> to vector<16x1xf32>
    %103 = vector.broadcast %102 : vector<16x1xf32> to vector<16x64xf32>
    %104 = vector.broadcast %cst_52 : f32 to vector<16x64xf32>
    %105 = arith.select %101, %103, %104 : vector<16x64xi1>, vector<16x64xf32>
    %106 = arith.addf %98, %105 : vector<16x64xf32>
    %107 = arith.mulf %89, %106 : vector<16x64xf32>
    %108 = arith.truncf %107 : vector<16x64xf32> to vector<16x64xbf16>
    %cst_53 = arith.constant dense<0.000000e+00> : vector<16x6xf32>
    %109 = tpu.matmul %108, %36, %cst_53 {dimension_numbers = #tpu.dot_dimension_numbers<[1], [0], [0], [1], [0, 0, 1, 1], [], []>} : vector<16x64xbf16>, vector<64x6xbf16>, vector<16x6xf32> -> vector<16x6xf32>
    %110 = arith.truncf %109 : vector<16x6xf32> to vector<16x6xbf16>
    %c0_54 = arith.constant 0 : index
    %c0_55 = arith.constant 0 : index
    %111 = vector.load %arg16[%c0_54, %c0_55] : memref<6x8xbf16, #tpu.memory_space<vmem>>, vector<6x8xbf16>
    %cst_56 = arith.constant dense<0.000000e+00> : vector<16x8xf32>
    %112 = tpu.matmul %110, %111, %cst_56 {dimension_numbers = #tpu.dot_dimension_numbers<[1], [0], [0], [1], [0, 0, 1, 1], [], []>} : vector<16x6xbf16>, vector<6x8xbf16>, vector<16x8xf32> -> vector<16x8xf32>
    %113 = vector.broadcast %34 : vector<1x8xf32> to vector<16x8xf32>
    %114 = arith.addf %113, %112 : vector<16x8xf32>
    %c0_57 = arith.constant 0 : index
    %c0_58 = arith.constant 0 : index
    %c0_59 = arith.constant 0 : index
    %115 = vector.load %arg5[%c0_57, %c0_58, %c0_59] : memref<1x16x10xbf16, #tpu.memory_space<vmem>>, vector<1x16x10xbf16>
    %116 = vector.shape_cast %115 : vector<1x16x10xbf16> to vector<16x10xbf16>
    %c0_60 = arith.constant 0 : index
    %c0_61 = arith.constant 0 : index
    %117 = vector.load %arg7[%c0_60, %c0_61] : memref<2x16xi32, #tpu.memory_space<vmem>>, vector<1x16xi32>
    %c1_62 = arith.constant 1 : index
    %c0_63 = arith.constant 0 : index
    %118 = vector.load %arg7[%c1_62, %c0_63] : memref<2x16xi32, #tpu.memory_space<vmem>>, vector<1x16xi32>
    %cst_64 = arith.constant 1.000000e+00 : f32
    %119 = vector.broadcast %cst_64 : f32 to vector<16x1xf32>
    %120 = arith.addf %32, %119 : vector<16x1xf32>
    %cst_65 = arith.constant 2.000000e+00 : f32
    %121 = vector.broadcast %cst_65 : f32 to vector<16x1xf32>
    %122 = arith.mulf %120, %121 : vector<16x1xf32>
    %cst_66 = arith.constant 5.000000e-01 : f32
    %123 = vector.broadcast %cst_66 : f32 to vector<16x1xf32>
    %124 = arith.subf %122, %123 : vector<16x1xf32>
    %cst_67 = arith.constant 0.000000e+00 : f32
    %cst_68 = arith.constant 3.000000e+00 : f32
    %125 = vector.broadcast %cst_67 : f32 to vector<16x1xf32>
    %126 = arith.maximumf %125, %124 : vector<16x1xf32>
    %127 = vector.broadcast %cst_68 : f32 to vector<16x1xf32>
    %128 = arith.minimumf %127, %126 : vector<16x1xf32>
    %cst_69 = arith.constant 1.000000e+00 : f32
    %129 = vector.broadcast %cst_69 : f32 to vector<16x1xf32>
    %130 = arith.addf %33, %129 : vector<16x1xf32>
    %cst_70 = arith.constant 2.000000e+00 : f32
    %131 = vector.broadcast %cst_70 : f32 to vector<16x1xf32>
    %132 = arith.mulf %130, %131 : vector<16x1xf32>
    %cst_71 = arith.constant 5.000000e-01 : f32
    %133 = vector.broadcast %cst_71 : f32 to vector<16x1xf32>
    %134 = arith.subf %132, %133 : vector<16x1xf32>
    %cst_72 = arith.constant 0.000000e+00 : f32
    %cst_73 = arith.constant 3.000000e+00 : f32
    %135 = vector.broadcast %cst_72 : f32 to vector<16x1xf32>
    %136 = arith.maximumf %135, %134 : vector<16x1xf32>
    %137 = vector.broadcast %cst_73 : f32 to vector<16x1xf32>
    %138 = arith.minimumf %137, %136 : vector<16x1xf32>
    %139 = math.floor %128 : vector<16x1xf32>
    %140 = math.floor %138 : vector<16x1xf32>
    %141 = arith.subf %128, %139 : vector<16x1xf32>
    %142 = arith.subf %138, %140 : vector<16x1xf32>
    %143 = arith.fptosi %139 : vector<16x1xf32> to vector<16x1xi32>
    %144 = arith.fptosi %140 : vector<16x1xf32> to vector<16x1xi32>
    %c1_i32_74 = arith.constant 1 : i32
    %145 = vector.broadcast %c1_i32_74 : i32 to vector<16x1xi32>
    %146 = arith.addi %143, %145 : vector<16x1xi32>
    %c3_i32 = arith.constant 3 : i32
    %147 = vector.broadcast %c3_i32 : i32 to vector<16x1xi32>
    %148 = arith.minsi %146, %147 : vector<16x1xi32>
    %c1_i32_75 = arith.constant 1 : i32
    %149 = vector.broadcast %c1_i32_75 : i32 to vector<16x1xi32>
    %150 = arith.addi %144, %149 : vector<16x1xi32>
    %c3_i32_76 = arith.constant 3 : i32
    %151 = vector.broadcast %c3_i32_76 : i32 to vector<16x1xi32>
    %152 = arith.minsi %150, %151 : vector<16x1xi32>
    %153 = vector.broadcast %117 : vector<1x16xi32> to vector<16x16xi32>
    %154 = vector.broadcast %144 : vector<16x1xi32> to vector<16x16xi32>
    %155 = arith.cmpi eq, %153, %154 : vector<16x16xi32>
    %cst_77 = arith.constant 1.000000e+00 : f32
    %156 = vector.broadcast %cst_77 : f32 to vector<16x1xf32>
    %157 = arith.subf %156, %142 : vector<16x1xf32>
    %cst_78 = arith.constant 0.000000e+00 : f32
    %158 = vector.shape_cast %157 : vector<16x1xf32> to vector<16x1xf32>
    %159 = vector.broadcast %158 : vector<16x1xf32> to vector<16x16xf32>
    %160 = vector.broadcast %cst_78 : f32 to vector<16x16xf32>
    %161 = arith.select %155, %159, %160 : vector<16x16xi1>, vector<16x16xf32>
    %162 = vector.broadcast %117 : vector<1x16xi32> to vector<16x16xi32>
    %163 = vector.broadcast %152 : vector<16x1xi32> to vector<16x16xi32>
    %164 = arith.cmpi eq, %162, %163 : vector<16x16xi32>
    %cst_79 = arith.constant 0.000000e+00 : f32
    %165 = vector.shape_cast %142 : vector<16x1xf32> to vector<16x1xf32>
    %166 = vector.broadcast %165 : vector<16x1xf32> to vector<16x16xf32>
    %167 = vector.broadcast %cst_79 : f32 to vector<16x16xf32>
    %168 = arith.select %164, %166, %167 : vector<16x16xi1>, vector<16x16xf32>
    %169 = arith.addf %161, %168 : vector<16x16xf32>
    %170 = vector.broadcast %118 : vector<1x16xi32> to vector<16x16xi32>
    %171 = vector.broadcast %143 : vector<16x1xi32> to vector<16x16xi32>
    %172 = arith.cmpi eq, %170, %171 : vector<16x16xi32>
    %cst_80 = arith.constant 1.000000e+00 : f32
    %173 = vector.broadcast %cst_80 : f32 to vector<16x1xf32>
    %174 = arith.subf %173, %141 : vector<16x1xf32>
    %cst_81 = arith.constant 0.000000e+00 : f32
    %175 = vector.shape_cast %174 : vector<16x1xf32> to vector<16x1xf32>
    %176 = vector.broadcast %175 : vector<16x1xf32> to vector<16x16xf32>
    %177 = vector.broadcast %cst_81 : f32 to vector<16x16xf32>
    %178 = arith.select %172, %176, %177 : vector<16x16xi1>, vector<16x16xf32>
    %179 = vector.broadcast %118 : vector<1x16xi32> to vector<16x16xi32>
    %180 = vector.broadcast %148 : vector<16x1xi32> to vector<16x16xi32>
    %181 = arith.cmpi eq, %179, %180 : vector<16x16xi32>
    %cst_82 = arith.constant 0.000000e+00 : f32
    %182 = vector.shape_cast %141 : vector<16x1xf32> to vector<16x1xf32>
    %183 = vector.broadcast %182 : vector<16x1xf32> to vector<16x16xf32>
    %184 = vector.broadcast %cst_82 : f32 to vector<16x16xf32>
    %185 = arith.select %181, %183, %184 : vector<16x16xi1>, vector<16x16xf32>
    %186 = arith.addf %178, %185 : vector<16x16xf32>
    %187 = arith.mulf %169, %186 : vector<16x16xf32>
    %188 = arith.truncf %187 : vector<16x16xf32> to vector<16x16xbf16>
    %cst_83 = arith.constant dense<0.000000e+00> : vector<16x10xf32>
    %189 = tpu.matmul %188, %116, %cst_83 {dimension_numbers = #tpu.dot_dimension_numbers<[1], [0], [0], [1], [0, 0, 1, 1], [], []>} : vector<16x16xbf16>, vector<16x10xbf16>, vector<16x10xf32> -> vector<16x10xf32>
    %190 = arith.truncf %189 : vector<16x10xf32> to vector<16x10xbf16>
    %c0_84 = arith.constant 0 : index
    %c0_85 = arith.constant 0 : index
    %191 = vector.load %arg17[%c0_84, %c0_85] : memref<10x8xbf16, #tpu.memory_space<vmem>>, vector<10x8xbf16>
    %cst_86 = arith.constant dense<0.000000e+00> : vector<16x8xf32>
    %192 = tpu.matmul %190, %191, %cst_86 {dimension_numbers = #tpu.dot_dimension_numbers<[1], [0], [0], [1], [0, 0, 1, 1], [], []>} : vector<16x10xbf16>, vector<10x8xbf16>, vector<16x8xf32> -> vector<16x8xf32>
    %193 = arith.addf %114, %192 : vector<16x8xf32>
    %cst_87 = arith.constant 0.000000e+00 : f32
    %194 = vector.broadcast %cst_87 : f32 to vector<16x8xf32>
    %195 = arith.maximumf %193, %194 : vector<16x8xf32>
    %196 = arith.truncf %195 : vector<16x8xf32> to vector<16x8xbf16>
    %c0_88 = arith.constant 0 : index
    %c0_89 = arith.constant 0 : index
    %197 = vector.load %arg19[%c0_88, %c0_89] : memref<8x8xbf16, #tpu.memory_space<vmem>>, vector<8x8xbf16>
    %cst_90 = arith.constant dense<0.000000e+00> : vector<16x8xf32>
    %198 = tpu.matmul %196, %197, %cst_90 {dimension_numbers = #tpu.dot_dimension_numbers<[1], [0], [0], [1], [0, 0, 1, 1], [], []>} : vector<16x8xbf16>, vector<8x8xbf16>, vector<16x8xf32> -> vector<16x8xf32>
    %c0_91 = arith.constant 0 : index
    %c0_92 = arith.constant 0 : index
    %199 = vector.load %arg20[%c0_91, %c0_92] : memref<1x8xf32, #tpu.memory_space<vmem>>, vector<1x8xf32>
    %200 = vector.broadcast %199 : vector<1x8xf32> to vector<16x8xf32>
    %201 = arith.addf %198, %200 : vector<16x8xf32>
    %202 = arith.truncf %201 : vector<16x8xf32> to vector<16x8xbf16>
    %203 = tpu.concatenate %4, %5, %202 in 1 : vector<16x3xbf16>, vector<16x8xbf16>, vector<16x8xbf16> -> vector<16x19xbf16>
    %c0_93 = arith.constant 0 : index
    %c0_94 = arith.constant 0 : index
    %c0_95 = arith.constant 0 : index
    %204 = vector.load %arg21[%c0_93, %c0_94, %c0_95] : memref<1x16x19xbf16, #tpu.memory_space<vmem>>, vector<1x16x19xbf16>
    %205 = vector.shape_cast %204 : vector<1x16x19xbf16> to vector<16x19xbf16>
    %206 = vector.shape_cast %203 : vector<16x19xbf16> to vector<1x16x19xbf16>
    tpu.vector_store %arg21[%c0_93, %c0_94, %c0_95], %206 {strides = array<i32>} : memref<1x16x19xbf16, #tpu.memory_space<vmem>>, vector<1x16x19xbf16>,
    return
  }
  func.func @transform_0(%arg0: i32, %arg1: i32) -> (i32, i32, i32) {
    %c0_i32 = arith.constant 0 : i32
    %c0_i32_0 = arith.constant 0 : i32
    return %arg0, %arg1, %c0_i32 : i32, i32, i32
  }
  func.func @transform_1(%arg0: i32, %arg1: i32) -> (i32, i32, i32) {
    %c0_i32 = arith.constant 0 : i32
    %c0_i32_0 = arith.constant 0 : i32
    return %arg0, %arg1, %c0_i32 : i32, i32, i32
  }
  func.func @transform_2(%arg0: i32, %arg1: i32) -> (i32, i32, i32) {
    %c0_i32 = arith.constant 0 : i32
    %c0_i32_0 = arith.constant 0 : i32
    %c0_i32_1 = arith.constant 0 : i32
    return %arg0, %c0_i32, %c0_i32_0 : i32, i32, i32
  }
  func.func @transform_3(%arg0: i32, %arg1: i32) -> (i32, i32, i32) {
    %c0_i32 = arith.constant 0 : i32
    %c0_i32_0 = arith.constant 0 : i32
    %c0_i32_1 = arith.constant 0 : i32
    return %arg0, %c0_i32, %c0_i32_0 : i32, i32, i32
  }
  func.func @transform_4(%arg0: i32, %arg1: i32) -> (i32, i32) {
    %c0_i32 = arith.constant 0 : i32
    %c0_i32_0 = arith.constant 0 : i32
    %c0_i32_1 = arith.constant 0 : i32
    return %c0_i32, %c0_i32_0 : i32, i32
  }
  func.func @transform_5(%arg0: i32, %arg1: i32) -> (i32, i32) {
    %c0_i32 = arith.constant 0 : i32
    %c0_i32_0 = arith.constant 0 : i32
    %c0_i32_1 = arith.constant 0 : i32
    return %c0_i32, %c0_i32_0 : i32, i32
  }
  func.func @transform_6(%arg0: i32, %arg1: i32) -> (i32, i32) {
    %c0_i32 = arith.constant 0 : i32
    %c0_i32_0 = arith.constant 0 : i32
    %c0_i32_1 = arith.constant 0 : i32
    return %c0_i32, %c0_i32_0 : i32, i32
  }
  func.func @transform_7(%arg0: i32, %arg1: i32) -> (i32, i32) {
    %c0_i32 = arith.constant 0 : i32
    %c0_i32_0 = arith.constant 0 : i32
    %c0_i32_1 = arith.constant 0 : i32
    return %c0_i32, %c0_i32_0 : i32, i32
  }
  func.func @transform_8(%arg0: i32, %arg1: i32) -> (i32, i32) {
    %c0_i32 = arith.constant 0 : i32
    %c0_i32_0 = arith.constant 0 : i32
    %c0_i32_1 = arith.constant 0 : i32
    return %c0_i32, %c0_i32_0 : i32, i32
  }
  func.func @transform_9(%arg0: i32, %arg1: i32) -> (i32, i32) {
    %c0_i32 = arith.constant 0 : i32
    %c0_i32_0 = arith.constant 0 : i32
    %c0_i32_1 = arith.constant 0 : i32
    return %c0_i32, %c0_i32_0 : i32, i32
  }
  func.func @transform_10(%arg0: i32, %arg1: i32) -> (i32, i32) {
    %c0_i32 = arith.constant 0 : i32
    %c0_i32_0 = arith.constant 0 : i32
    %c0_i32_1 = arith.constant 0 : i32
    return %c0_i32, %c0_i32_0 : i32, i32
  }
  func.func @transform_11(%arg0: i32, %arg1: i32) -> (i32, i32) {
    %c0_i32 = arith.constant 0 : i32
    %c0_i32_0 = arith.constant 0 : i32
    %c0_i32_1 = arith.constant 0 : i32
    return %c0_i32, %c0_i32_0 : i32, i32
  }
  func.func @transform_12(%arg0: i32, %arg1: i32) -> (i32, i32) {
    %c0_i32 = arith.constant 0 : i32
    %c0_i32_0 = arith.constant 0 : i32
    %c0_i32_1 = arith.constant 0 : i32
    return %c0_i32, %c0_i32_0 : i32, i32
  }
  func.func @transform_13(%arg0: i32, %arg1: i32) -> (i32, i32) {
    %c0_i32 = arith.constant 0 : i32
    %c0_i32_0 = arith.constant 0 : i32
    %c0_i32_1 = arith.constant 0 : i32
    return %c0_i32, %c0_i32_0 : i32, i32
  }
  func.func @transform_14(%arg0: i32, %arg1: i32) -> (i32, i32) {
    %c0_i32 = arith.constant 0 : i32
    %c0_i32_0 = arith.constant 0 : i32
    %c0_i32_1 = arith.constant 0 : i32
    return %c0_i32, %c0_i32_0 : i32, i32
  }
  func.func @transform_15(%arg0: i32, %arg1: i32) -> (i32, i32) {
    %c0_i32 = arith.constant 0 : i32
    %c0_i32_0 = arith.constant 0 : i32
    %c0_i32_1 = arith.constant 0 : i32
    return %c0_i32, %c0_i32_0 : i32, i32
  }
  func.func @transform_16(%arg0: i32, %arg1: i32) -> (i32, i32) {
    %c0_i32 = arith.constant 0 : i32
    %c0_i32_0 = arith.constant 0 : i32
    %c0_i32_1 = arith.constant 0 : i32
    return %c0_i32, %c0_i32_0 : i32, i32
  }
  func.func @transform_17(%arg0: i32, %arg1: i32) -> (i32, i32) {
    %c0_i32 = arith.constant 0 : i32
    %c0_i32_0 = arith.constant 0 : i32
    %c0_i32_1 = arith.constant 0 : i32
    return %c0_i32, %c0_i32_0 : i32, i32
  }
  func.func @transform_18(%arg0: i32, %arg1: i32) -> (i32, i32) {
    %c0_i32 = arith.constant 0 : i32
    %c0_i32_0 = arith.constant 0 : i32
    %c0_i32_1 = arith.constant 0 : i32
    return %c0_i32, %c0_i32_0 : i32, i32
  }
  func.func @transform_19(%arg0: i32, %arg1: i32) -> (i32, i32, i32) {
    %c0_i32 = arith.constant 0 : i32
    %c0_i32_0 = arith.constant 0 : i32
    return %arg0, %arg1, %c0_i32 : i32, i32, i32
  }
}

module attributes {stable_mosaic.version = 11 : i64} {
  func.func @_gconv_kernel(%arg0: i32, %arg1: i32, %arg2: memref<1x16x3xi32, #tpu.memory_space<vmem>>, %arg3: memref<1x16x15xbf16, #tpu.memory_space<vmem>>, %arg4: memref<1x16x15xbf16, #tpu.memory_space<vmem>>, %arg5: memref<15x12xbf16, #tpu.memory_space<vmem>>, %arg6: memref<1x12xf32, #tpu.memory_space<vmem>>, %arg7: memref<15x12xbf16, #tpu.memory_space<vmem>>, %arg8: memref<1x16x15xbf16, #tpu.memory_space<vmem>>) attributes {dimension_semantics = [#tpu.dimension_semantics<parallel>, #tpu.dimension_semantics<parallel>], iteration_bounds = array<i64: 2, 1>, scalar_prefetch = 0 : i64, scratch_operands = 0 : i64, tpu.core_type = #tpu.core_type<tc>, window_params = [{transform_indices = @transform_0, window_bounds = array<i64: 1, 16, 3>}, {transform_indices = @transform_1, window_bounds = array<i64: 1, 16, 15>}, {transform_indices = @transform_2, window_bounds = array<i64: 1, 16, 15>}, {pipeline_mode = #tpu.pipeline_mode<synchronous>, transform_indices = @transform_3, window_bounds = array<i64: 15, 12>}, {pipeline_mode = #tpu.pipeline_mode<synchronous>, transform_indices = @transform_4, window_bounds = array<i64: 1, 12>}, {pipeline_mode = #tpu.pipeline_mode<synchronous>, transform_indices = @transform_5, window_bounds = array<i64: 15, 12>}, {transform_indices = @transform_6, window_bounds = array<i64: 1, 16, 15>}]} {
    %c0 = arith.constant 0 : index
    %c0_0 = arith.constant 0 : index
    %c0_1 = arith.constant 0 : index
    %0 = vector.load %arg2[%c0, %c0_0, %c0_1] : memref<1x16x3xi32, #tpu.memory_space<vmem>>, vector<1x16x3xi32>
    %1 = vector.shape_cast %0 : vector<1x16x3xi32> to vector<16x3xi32>
    %c0_2 = arith.constant 0 : index
    %c0_3 = arith.constant 0 : index
    %c0_4 = arith.constant 0 : index
    %2 = vector.load %arg3[%c0_2, %c0_3, %c0_4] : memref<1x16x15xbf16, #tpu.memory_space<vmem>>, vector<1x16x15xbf16>
    %3 = vector.shape_cast %2 : vector<1x16x15xbf16> to vector<16x15xbf16>
    %c0_5 = arith.constant 0 : index
    %c0_6 = arith.constant 0 : index
    %c0_7 = arith.constant 0 : index
    %4 = vector.load %arg4[%c0_5, %c0_6, %c0_7] : memref<1x16x15xbf16, #tpu.memory_space<vmem>>, vector<1x16x15xbf16>
    %5 = vector.shape_cast %4 : vector<1x16x15xbf16> to vector<16x15xbf16>
    %6 = tpu.iota {dimensions = array<i32: 1>} : vector<1x16xi32>
    %7 = vector.extract_strided_slice %1 {offsets = [0, 0], sizes = [16, 1], strides = [1, 1]} : vector<16x3xi32> to vector<16x1xi32>
    %8 = vector.broadcast %6 : vector<1x16xi32> to vector<16x16xi32>
    %9 = vector.broadcast %7 : vector<16x1xi32> to vector<16x16xi32>
    %10 = arith.cmpi eq, %8, %9 : vector<16x16xi32>
    %11 = vector.extract_strided_slice %1 {offsets = [0, 1], sizes = [16, 1], strides = [1, 1]} : vector<16x3xi32> to vector<16x1xi32>
    %12 = vector.broadcast %6 : vector<1x16xi32> to vector<16x16xi32>
    %13 = vector.broadcast %11 : vector<16x1xi32> to vector<16x16xi32>
    %14 = arith.cmpi eq, %12, %13 : vector<16x16xi32>
    %15 = arith.ori %10, %14 : vector<16x16xi1>
    %16 = vector.extract_strided_slice %1 {offsets = [0, 2], sizes = [16, 1], strides = [1, 1]} : vector<16x3xi32> to vector<16x1xi32>
    %17 = vector.broadcast %6 : vector<1x16xi32> to vector<16x16xi32>
    %18 = vector.broadcast %16 : vector<16x1xi32> to vector<16x16xi32>
    %19 = arith.cmpi eq, %17, %18 : vector<16x16xi32>
    %20 = arith.ori %15, %19 : vector<16x16xi1>
    %21 = arith.extui %20 : vector<16x16xi1> to vector<16x16xi32>
    %22 = arith.sitofp %21 : vector<16x16xi32> to vector<16x16xf32>
    %23 = arith.truncf %22 : vector<16x16xf32> to vector<16x16xbf16>
    %cst = arith.constant dense<0.000000e+00> : vector<16x15xf32>
    %24 = tpu.matmul %23, %3, %cst {dimension_numbers = #tpu.dot_dimension_numbers<[1], [0], [0], [1], [0, 0, 1, 1], [], []>} : vector<16x16xbf16>, vector<16x15xbf16>, vector<16x15xf32> -> vector<16x15xf32>
    %25 = arith.truncf %24 : vector<16x15xf32> to vector<16x15xbf16>
    %c0_8 = arith.constant 0 : index
    %c0_9 = arith.constant 0 : index
    %26 = vector.load %arg5[%c0_8, %c0_9] : memref<15x12xbf16, #tpu.memory_space<vmem>>, vector<15x12xbf16>
    %cst_10 = arith.constant dense<0.000000e+00> : vector<16x12xf32>
    %27 = tpu.matmul %25, %26, %cst_10 {dimension_numbers = #tpu.dot_dimension_numbers<[1], [0], [0], [1], [0, 0, 1, 1], [], []>} : vector<16x15xbf16>, vector<15x12xbf16>, vector<16x12xf32> -> vector<16x12xf32>
    %c0_11 = arith.constant 0 : index
    %c0_12 = arith.constant 0 : index
    %28 = vector.load %arg6[%c0_11, %c0_12] : memref<1x12xf32, #tpu.memory_space<vmem>>, vector<1x12xf32>
    %29 = vector.broadcast %28 : vector<1x12xf32> to vector<16x12xf32>
    %30 = arith.addf %27, %29 : vector<16x12xf32>
    %c0_13 = arith.constant 0 : index
    %c0_14 = arith.constant 0 : index
    %31 = vector.load %arg7[%c0_13, %c0_14] : memref<15x12xbf16, #tpu.memory_space<vmem>>, vector<15x12xbf16>
    %cst_15 = arith.constant dense<0.000000e+00> : vector<16x12xf32>
    %32 = tpu.matmul %5, %31, %cst_15 {dimension_numbers = #tpu.dot_dimension_numbers<[1], [0], [0], [1], [0, 0, 1, 1], [], []>} : vector<16x15xbf16>, vector<15x12xbf16>, vector<16x12xf32> -> vector<16x12xf32>
    %33 = arith.addf %30, %32 : vector<16x12xf32>
    %cst_16 = arith.constant 0.000000e+00 : f32
    %34 = vector.broadcast %cst_16 : f32 to vector<16x12xf32>
    %35 = arith.maximumf %33, %34 : vector<16x12xf32>
    %36 = vector.extract_strided_slice %5 {offsets = [0, 0], sizes = [16, 3], strides = [1, 1]} : vector<16x15xbf16> to vector<16x3xbf16>
    %37 = arith.truncf %35 : vector<16x12xf32> to vector<16x12xbf16>
    %38 = tpu.concatenate %36, %37 in 1 : vector<16x3xbf16>, vector<16x12xbf16> -> vector<16x15xbf16>
    %c0_17 = arith.constant 0 : index
    %c0_18 = arith.constant 0 : index
    %c0_19 = arith.constant 0 : index
    %39 = vector.load %arg8[%c0_17, %c0_18, %c0_19] : memref<1x16x15xbf16, #tpu.memory_space<vmem>>, vector<1x16x15xbf16>
    %40 = vector.shape_cast %39 : vector<1x16x15xbf16> to vector<16x15xbf16>
    %41 = vector.shape_cast %38 : vector<16x15xbf16> to vector<1x16x15xbf16>
    tpu.vector_store %arg8[%c0_17, %c0_18, %c0_19], %41 {strides = array<i32>} : memref<1x16x15xbf16, #tpu.memory_space<vmem>>, vector<1x16x15xbf16>,
    return
  }
  func.func @transform_0(%arg0: i32, %arg1: i32) -> (i32, i32, i32) {
    %c0_i32 = arith.constant 0 : i32
    %c0_i32_0 = arith.constant 0 : i32
    return %arg0, %arg1, %c0_i32 : i32, i32, i32
  }
  func.func @transform_1(%arg0: i32, %arg1: i32) -> (i32, i32, i32) {
    %c0_i32 = arith.constant 0 : i32
    %c0_i32_0 = arith.constant 0 : i32
    %c0_i32_1 = arith.constant 0 : i32
    return %arg0, %c0_i32, %c0_i32_0 : i32, i32, i32
  }
  func.func @transform_2(%arg0: i32, %arg1: i32) -> (i32, i32, i32) {
    %c0_i32 = arith.constant 0 : i32
    %c0_i32_0 = arith.constant 0 : i32
    return %arg0, %arg1, %c0_i32 : i32, i32, i32
  }
  func.func @transform_3(%arg0: i32, %arg1: i32) -> (i32, i32) {
    %c0_i32 = arith.constant 0 : i32
    %c0_i32_0 = arith.constant 0 : i32
    %c0_i32_1 = arith.constant 0 : i32
    return %c0_i32, %c0_i32_0 : i32, i32
  }
  func.func @transform_4(%arg0: i32, %arg1: i32) -> (i32, i32) {
    %c0_i32 = arith.constant 0 : i32
    %c0_i32_0 = arith.constant 0 : i32
    %c0_i32_1 = arith.constant 0 : i32
    return %c0_i32, %c0_i32_0 : i32, i32
  }
  func.func @transform_5(%arg0: i32, %arg1: i32) -> (i32, i32) {
    %c0_i32 = arith.constant 0 : i32
    %c0_i32_0 = arith.constant 0 : i32
    %c0_i32_1 = arith.constant 0 : i32
    return %c0_i32, %c0_i32_0 : i32, i32
  }
  func.func @transform_6(%arg0: i32, %arg1: i32) -> (i32, i32, i32) {
    %c0_i32 = arith.constant 0 : i32
    %c0_i32_0 = arith.constant 0 : i32
    return %arg0, %arg1, %c0_i32 : i32, i32, i32
  }
}

module attributes {stable_mosaic.version = 11 : i64} {
  func.func @_gconv_loc_kernel(%arg0: i32, %arg1: i32, %arg2: memref<1x16x3xi32, #tpu.memory_space<vmem>>, %arg3: memref<1x16x15xbf16, #tpu.memory_space<vmem>>, %arg4: memref<1x16x15xbf16, #tpu.memory_space<vmem>>, %arg5: memref<1x16x3xf32, #tpu.memory_space<vmem>>, %arg6: memref<15x8xbf16, #tpu.memory_space<vmem>>, %arg7: memref<1x8xf32, #tpu.memory_space<vmem>>, %arg8: memref<15x8xbf16, #tpu.memory_space<vmem>>, %arg9: memref<3x3xf32, #tpu.memory_space<vmem>>, %arg10: memref<8x3xf32, #tpu.memory_space<vmem>>, %arg11: memref<1x3xf32, #tpu.memory_space<vmem>>, %arg12: memref<1x16x8xf32, #tpu.memory_space<vmem>>, %arg13: memref<1x16x3xf32, #tpu.memory_space<vmem>>) attributes {dimension_semantics = [#tpu.dimension_semantics<parallel>, #tpu.dimension_semantics<parallel>], iteration_bounds = array<i64: 2, 1>, scalar_prefetch = 0 : i64, scratch_operands = 0 : i64, tpu.core_type = #tpu.core_type<tc>, window_params = [{transform_indices = @transform_0, window_bounds = array<i64: 1, 16, 3>}, {transform_indices = @transform_1, window_bounds = array<i64: 1, 16, 15>}, {transform_indices = @transform_2, window_bounds = array<i64: 1, 16, 15>}, {transform_indices = @transform_3, window_bounds = array<i64: 1, 16, 3>}, {pipeline_mode = #tpu.pipeline_mode<synchronous>, transform_indices = @transform_4, window_bounds = array<i64: 15, 8>}, {pipeline_mode = #tpu.pipeline_mode<synchronous>, transform_indices = @transform_5, window_bounds = array<i64: 1, 8>}, {pipeline_mode = #tpu.pipeline_mode<synchronous>, transform_indices = @transform_6, window_bounds = array<i64: 15, 8>}, {pipeline_mode = #tpu.pipeline_mode<synchronous>, transform_indices = @transform_7, window_bounds = array<i64: 3, 3>}, {pipeline_mode = #tpu.pipeline_mode<synchronous>, transform_indices = @transform_8, window_bounds = array<i64: 8, 3>}, {pipeline_mode = #tpu.pipeline_mode<synchronous>, transform_indices = @transform_9, window_bounds = array<i64: 1, 3>}, {transform_indices = @transform_10, window_bounds = array<i64: 1, 16, 8>}, {transform_indices = @transform_11, window_bounds = array<i64: 1, 16, 3>}]} {
    %c0 = arith.constant 0 : index
    %c0_0 = arith.constant 0 : index
    %c0_1 = arith.constant 0 : index
    %0 = vector.load %arg2[%c0, %c0_0, %c0_1] : memref<1x16x3xi32, #tpu.memory_space<vmem>>, vector<1x16x3xi32>
    %1 = vector.shape_cast %0 : vector<1x16x3xi32> to vector<16x3xi32>
    %c0_2 = arith.constant 0 : index
    %c0_3 = arith.constant 0 : index
    %c0_4 = arith.constant 0 : index
    %2 = vector.load %arg3[%c0_2, %c0_3, %c0_4] : memref<1x16x15xbf16, #tpu.memory_space<vmem>>, vector<1x16x15xbf16>
    %3 = vector.shape_cast %2 : vector<1x16x15xbf16> to vector<16x15xbf16>
    %c0_5 = arith.constant 0 : index
    %c0_6 = arith.constant 0 : index
    %c0_7 = arith.constant 0 : index
    %4 = vector.load %arg4[%c0_5, %c0_6, %c0_7] : memref<1x16x15xbf16, #tpu.memory_space<vmem>>, vector<1x16x15xbf16>
    %5 = vector.shape_cast %4 : vector<1x16x15xbf16> to vector<16x15xbf16>
    %6 = tpu.iota {dimensions = array<i32: 1>} : vector<1x16xi32>
    %7 = vector.extract_strided_slice %1 {offsets = [0, 0], sizes = [16, 1], strides = [1, 1]} : vector<16x3xi32> to vector<16x1xi32>
    %8 = vector.broadcast %6 : vector<1x16xi32> to vector<16x16xi32>
    %9 = vector.broadcast %7 : vector<16x1xi32> to vector<16x16xi32>
    %10 = arith.cmpi eq, %8, %9 : vector<16x16xi32>
    %11 = vector.extract_strided_slice %1 {offsets = [0, 1], sizes = [16, 1], strides = [1, 1]} : vector<16x3xi32> to vector<16x1xi32>
    %12 = vector.broadcast %6 : vector<1x16xi32> to vector<16x16xi32>
    %13 = vector.broadcast %11 : vector<16x1xi32> to vector<16x16xi32>
    %14 = arith.cmpi eq, %12, %13 : vector<16x16xi32>
    %15 = arith.ori %10, %14 : vector<16x16xi1>
    %16 = vector.extract_strided_slice %1 {offsets = [0, 2], sizes = [16, 1], strides = [1, 1]} : vector<16x3xi32> to vector<16x1xi32>
    %17 = vector.broadcast %6 : vector<1x16xi32> to vector<16x16xi32>
    %18 = vector.broadcast %16 : vector<16x1xi32> to vector<16x16xi32>
    %19 = arith.cmpi eq, %17, %18 : vector<16x16xi32>
    %20 = arith.ori %15, %19 : vector<16x16xi1>
    %21 = arith.extui %20 : vector<16x16xi1> to vector<16x16xi32>
    %22 = arith.sitofp %21 : vector<16x16xi32> to vector<16x16xf32>
    %23 = arith.truncf %22 : vector<16x16xf32> to vector<16x16xbf16>
    %cst = arith.constant dense<0.000000e+00> : vector<16x15xf32>
    %24 = tpu.matmul %23, %3, %cst {dimension_numbers = #tpu.dot_dimension_numbers<[1], [0], [0], [1], [0, 0, 1, 1], [], []>} : vector<16x16xbf16>, vector<16x15xbf16>, vector<16x15xf32> -> vector<16x15xf32>
    %25 = arith.truncf %24 : vector<16x15xf32> to vector<16x15xbf16>
    %c0_8 = arith.constant 0 : index
    %c0_9 = arith.constant 0 : index
    %26 = vector.load %arg6[%c0_8, %c0_9] : memref<15x8xbf16, #tpu.memory_space<vmem>>, vector<15x8xbf16>
    %cst_10 = arith.constant dense<0.000000e+00> : vector<16x8xf32>
    %27 = tpu.matmul %25, %26, %cst_10 {dimension_numbers = #tpu.dot_dimension_numbers<[1], [0], [0], [1], [0, 0, 1, 1], [], []>} : vector<16x15xbf16>, vector<15x8xbf16>, vector<16x8xf32> -> vector<16x8xf32>
    %c0_11 = arith.constant 0 : index
    %c0_12 = arith.constant 0 : index
    %28 = vector.load %arg7[%c0_11, %c0_12] : memref<1x8xf32, #tpu.memory_space<vmem>>, vector<1x8xf32>
    %29 = vector.broadcast %28 : vector<1x8xf32> to vector<16x8xf32>
    %30 = arith.addf %27, %29 : vector<16x8xf32>
    %c0_13 = arith.constant 0 : index
    %c0_14 = arith.constant 0 : index
    %31 = vector.load %arg8[%c0_13, %c0_14] : memref<15x8xbf16, #tpu.memory_space<vmem>>, vector<15x8xbf16>
    %cst_15 = arith.constant dense<0.000000e+00> : vector<16x8xf32>
    %32 = tpu.matmul %5, %31, %cst_15 {dimension_numbers = #tpu.dot_dimension_numbers<[1], [0], [0], [1], [0, 0, 1, 1], [], []>} : vector<16x15xbf16>, vector<15x8xbf16>, vector<16x8xf32> -> vector<16x8xf32>
    %33 = arith.addf %30, %32 : vector<16x8xf32>
    %cst_16 = arith.constant 0.000000e+00 : f32
    %34 = vector.broadcast %cst_16 : f32 to vector<16x8xf32>
    %35 = arith.maximumf %33, %34 : vector<16x8xf32>
    %c0_17 = arith.constant 0 : index
    %c0_18 = arith.constant 0 : index
    %c0_19 = arith.constant 0 : index
    %36 = vector.load %arg12[%c0_17, %c0_18, %c0_19] : memref<1x16x8xf32, #tpu.memory_space<vmem>>, vector<1x16x8xf32>
    %37 = vector.shape_cast %36 : vector<1x16x8xf32> to vector<16x8xf32>
    %38 = vector.shape_cast %35 : vector<16x8xf32> to vector<1x16x8xf32>
    tpu.vector_store %arg12[%c0_17, %c0_18, %c0_19], %38 {strides = array<i32>} : memref<1x16x8xf32, #tpu.memory_space<vmem>>, vector<1x16x8xf32>,
    %c0_20 = arith.constant 0 : index
    %c0_21 = arith.constant 0 : index
    %c0_22 = arith.constant 0 : index
    %39 = vector.load %arg5[%c0_20, %c0_21, %c0_22] : memref<1x16x3xf32, #tpu.memory_space<vmem>>, vector<1x16x3xf32>
    %40 = vector.shape_cast %39 : vector<1x16x3xf32> to vector<16x3xf32>
    %c0_23 = arith.constant 0 : index
    %c0_24 = arith.constant 0 : index
    %41 = vector.load %arg9[%c0_23, %c0_24] : memref<3x3xf32, #tpu.memory_space<vmem>>, vector<3x3xf32>
    %cst_25 = arith.constant dense<0.000000e+00> : vector<16x3xf32>
    %42 = tpu.matmul %40, %41, %cst_25 {dimension_numbers = #tpu.dot_dimension_numbers<[1], [0], [0], [1], [0, 0, 1, 1], [], []>} : vector<16x3xf32>, vector<3x3xf32>, vector<16x3xf32> -> vector<16x3xf32>
    %c0_26 = arith.constant 0 : index
    %c0_27 = arith.constant 0 : index
    %43 = vector.load %arg10[%c0_26, %c0_27] : memref<8x3xf32, #tpu.memory_space<vmem>>, vector<8x3xf32>
    %cst_28 = arith.constant dense<0.000000e+00> : vector<16x3xf32>
    %44 = tpu.matmul %35, %43, %cst_28 {dimension_numbers = #tpu.dot_dimension_numbers<[1], [0], [0], [1], [0, 0, 1, 1], [], []>} : vector<16x8xf32>, vector<8x3xf32>, vector<16x3xf32> -> vector<16x3xf32>
    %45 = arith.addf %42, %44 : vector<16x3xf32>
    %c0_29 = arith.constant 0 : index
    %c0_30 = arith.constant 0 : index
    %46 = vector.load %arg11[%c0_29, %c0_30] : memref<1x3xf32, #tpu.memory_space<vmem>>, vector<1x3xf32>
    %47 = vector.broadcast %46 : vector<1x3xf32> to vector<16x3xf32>
    %48 = arith.addf %45, %47 : vector<16x3xf32>
    %49 = math.tanh %48 : vector<16x3xf32>
    %50 = arith.addf %40, %49 : vector<16x3xf32>
    %c0_31 = arith.constant 0 : index
    %c0_32 = arith.constant 0 : index
    %c0_33 = arith.constant 0 : index
    %51 = vector.load %arg13[%c0_31, %c0_32, %c0_33] : memref<1x16x3xf32, #tpu.memory_space<vmem>>, vector<1x16x3xf32>
    %52 = vector.shape_cast %51 : vector<1x16x3xf32> to vector<16x3xf32>
    %53 = vector.shape_cast %50 : vector<16x3xf32> to vector<1x16x3xf32>
    tpu.vector_store %arg13[%c0_31, %c0_32, %c0_33], %53 {strides = array<i32>} : memref<1x16x3xf32, #tpu.memory_space<vmem>>, vector<1x16x3xf32>,
    return
  }
  func.func @transform_0(%arg0: i32, %arg1: i32) -> (i32, i32, i32) {
    %c0_i32 = arith.constant 0 : i32
    %c0_i32_0 = arith.constant 0 : i32
    return %arg0, %arg1, %c0_i32 : i32, i32, i32
  }
  func.func @transform_1(%arg0: i32, %arg1: i32) -> (i32, i32, i32) {
    %c0_i32 = arith.constant 0 : i32
    %c0_i32_0 = arith.constant 0 : i32
    %c0_i32_1 = arith.constant 0 : i32
    return %arg0, %c0_i32, %c0_i32_0 : i32, i32, i32
  }
  func.func @transform_2(%arg0: i32, %arg1: i32) -> (i32, i32, i32) {
    %c0_i32 = arith.constant 0 : i32
    %c0_i32_0 = arith.constant 0 : i32
    return %arg0, %arg1, %c0_i32 : i32, i32, i32
  }
  func.func @transform_3(%arg0: i32, %arg1: i32) -> (i32, i32, i32) {
    %c0_i32 = arith.constant 0 : i32
    %c0_i32_0 = arith.constant 0 : i32
    return %arg0, %arg1, %c0_i32 : i32, i32, i32
  }
  func.func @transform_4(%arg0: i32, %arg1: i32) -> (i32, i32) {
    %c0_i32 = arith.constant 0 : i32
    %c0_i32_0 = arith.constant 0 : i32
    %c0_i32_1 = arith.constant 0 : i32
    return %c0_i32, %c0_i32_0 : i32, i32
  }
  func.func @transform_5(%arg0: i32, %arg1: i32) -> (i32, i32) {
    %c0_i32 = arith.constant 0 : i32
    %c0_i32_0 = arith.constant 0 : i32
    %c0_i32_1 = arith.constant 0 : i32
    return %c0_i32, %c0_i32_0 : i32, i32
  }
  func.func @transform_6(%arg0: i32, %arg1: i32) -> (i32, i32) {
    %c0_i32 = arith.constant 0 : i32
    %c0_i32_0 = arith.constant 0 : i32
    %c0_i32_1 = arith.constant 0 : i32
    return %c0_i32, %c0_i32_0 : i32, i32
  }
  func.func @transform_7(%arg0: i32, %arg1: i32) -> (i32, i32) {
    %c0_i32 = arith.constant 0 : i32
    %c0_i32_0 = arith.constant 0 : i32
    %c0_i32_1 = arith.constant 0 : i32
    return %c0_i32, %c0_i32_0 : i32, i32
  }
  func.func @transform_8(%arg0: i32, %arg1: i32) -> (i32, i32) {
    %c0_i32 = arith.constant 0 : i32
    %c0_i32_0 = arith.constant 0 : i32
    %c0_i32_1 = arith.constant 0 : i32
    return %c0_i32, %c0_i32_0 : i32, i32
  }
  func.func @transform_9(%arg0: i32, %arg1: i32) -> (i32, i32) {
    %c0_i32 = arith.constant 0 : i32
    %c0_i32_0 = arith.constant 0 : i32
    %c0_i32_1 = arith.constant 0 : i32
    return %c0_i32, %c0_i32_0 : i32, i32
  }
  func.func @transform_10(%arg0: i32, %arg1: i32) -> (i32, i32, i32) {
    %c0_i32 = arith.constant 0 : i32
    %c0_i32_0 = arith.constant 0 : i32
    return %arg0, %arg1, %c0_i32 : i32, i32, i32
  }
  func.func @transform_11(%arg0: i32, %arg1: i32) -> (i32, i32, i32) {
    %c0_i32 = arith.constant 0 : i32
    %c0_i32_0 = arith.constant 0 : i32
    return %arg0, %arg1, %c0_i32 : i32, i32, i32
  }
}

</mosaic_0001>

<bundles_post_ra>
// kernel: graph_conv_decoder_forward.6
= control target key start
LH: loop header
LB: loop body
LE: loop exit
PB: predicated region body
PF: predicated region fallthrough
CT: control target
= control target key end

     0   :  { %s574_s9 = smov 0   ;;  %s576_s10 = smov 0   ;;  %s632_s0 = inlined_call_operand.vmem [shape: f32[2,16,4], index: 0, kind: input, shape index: {}]   ;;  %s633_s1 = inlined_call_operand.vmem [shape: f32[2,4,16], index: 1, kind: input, shape index: {}]   ;;  %s634_s2 = inlined_call_operand.vmem [shape: s32[2,16,3], index: 2, kind: output, shape index: {}]  }
   0x1   :  { %s578_s11 = smov 0  }
   0x2 LB: > { %s24_s12 = sadd.s32 1, %s553_s10  ;;  %p478_p0 = scmp.ge.s32.totalorder %s557_s11, 1  ;;  %s557_s11 = sphi %s578_s11, %s12_s11   ;;  %s553_s10 = sphi %s576_s10, %s636_s10   ;;  %s549_s9 = sphi %s574_s9, %s635_s9  }
   0x3   : > { %p26_p1 = scmp.ge.s32.totalorder %s24_s12, 2  ;;  %p142_p2 = scmp.lt.s32.totalorder %s557_s11, 3 }
   0x5   : > { %s638_s12 = smov (%p26_p1, %s24_s12), 0  ;;  %p143_p3 = pnand %p478_p0, %p142_p2 }
   0x6   : > { %p177_p4 = scmp.lt.s32.totalorder (!%p143_p3), %s549_s9, 1  ;;  %vm210_vm0 = vcmask (!%p143_p3), 1043456   ;;  %vm203_vm1 = vcmask (!%p143_p3), 31744   ;;  %v290_v3 = vlaneseq (!%p143_p3)  ;;  %vm303_vm3 = vcmask (!%p143_p3), 130048  }
   0x7   : > { %146 = sbr.rel (%p143_p3) target bundleno = 1112 (0x458), region = 28  ;;  %vm366_vm15 = vcmask (!%p143_p3), 7168  }
   0x8   : > { %v291_v4 = vshrl.u32 (!%p143_p3), %v290_v3, 7  ;;  %v297_v5 = vand.u32 (!%p143_p3), 127, %v290_v3 }
   0xa   : > { %v292_v6 = vadd.s32 (!%p143_p3), 8, %v291_v4  ;;  %vm299_vm2 = vcmp.eq.s32.totalorder (!%p143_p3), %v291_v4, %v297_v5  ;;  %v298_v13 = vcvt.s32.f32 (!%p143_p3), %v297_v5 }
   0xc   : > { %vm300_vm4 = vcmp.eq.s32.totalorder (!%p143_p3), %v292_v6, %v297_v5 }
   0xe   : > { %s640_s9 = smov (!%p177_p4, %s549_s9), 1 }
   0xf   : > { %s481_s13 = sshll.u32 %s640_s9, 2  ;;  %s489_s14 = sshll.u32 %s640_s9, 4 }
  0x10   : > { %s189_s17 = scalar_lea.vmem %s633_s1, %s481_s13  ;;  %s184_s20 = scalar_lea.vmem %s632_s0, %s489_s14 }
  0x11   : > { %v202_v0 = vld [vmem:[%s189_s17] sm:$0xf]  ;;  %v201_v2 = vld [vmem:[%s184_s20 + $0x8] sm:$0xff]  ;;  %s198_s23 = scalar_lea.vmem %s634_s2, %s489_s14 }
  0x12   : > { %v200_v1 = vld [vmem:[%s184_s20] sm:$0xff]  ;;  %494 = vmatprep.subr.msk.mxu0 %vm210_vm0, %v202_v0 }
  0x13   : > { %496 = vmatprep.mubr.msk.f32.mxu0 %vm203_vm1, %v200_v1  ;;  %495 = vmatpush3.msk.msra.mxu0 %vm210_vm0, %v202_v0  ;;  %vm369_vm0 = vcmask 15360  }
  0x14   : > { %497 = vmatmul.mubr.msk.f32.vlgmr.msra.gmra.mrb[0].mxu0 %vm203_vm1, %v201_v2  ;;  %vm372_vm1 = vcmask 23552  }
  0xe7   : > { %v498_v7 = vpop.f32.mrb[0].mxu0 }
  0xe8   : > { %v280_v8 = vpop.f32.mrb[1].mxu0  ;;  %v302_v11 = vsel %vm300_vm4, 1e+30, %v498_v7 }
  0xe9   : > { %v301_v9 = vsel %vm299_vm2, 1e+30, %v280_v8  ;;  %v307_v12 = vsel %vm303_vm3, %v302_v11, inf }
  0xea   : > { %v304_v10 = vsel %vm303_vm3, %v301_v9, inf }
  0xeb   : > { %305 = vmin.xlane.f32.xlu0 %v304_v10 }
  0xef   : > { %308 = vmin.xlane.f32.xlu0 %v307_v12 }
 0x178   : > { %v306_v14 = vpop.xlane.xlu0 %305 }
 0x179   : > { %vm310_vm5 = vcmp.le.f32.partialorder %v301_v9, %v306_v14 }
 0x17a   : > { %v312_v15 = vsel %vm310_vm5, %v298_v13, 16.0 }
 0x17b   : > { %v314_v16 = vsel %vm303_vm3, %v312_v15, inf }
 0x17c   : > { %315 = vmin.xlane.f32.xlu1 %v314_v16  ;;  %v309_v17 = vpop.xlane.xlu0 %308 }
 0x17d   : > { %vm311_vm6 = vcmp.le.f32.partialorder %v302_v11, %v309_v17 }
 0x17e   : > { %v313_v18 = vsel %vm311_vm6, %v298_v13, 16.0 }
 0x17f   : > { %v317_v19 = vsel %vm303_vm3, %v313_v18, inf }
 0x180   : > { %318 = vmin.xlane.f32.xlu1 %v317_v19 }
 0x209   : > { %v316_v20 = vpop.xlane.xlu1 %315 }
 0x20a   : > { %vm322_vm7 = vcmp.eq.f32.partialorder %v298_v13, %v316_v20  ;;  %v499_v45 = vtrunc.f32 %v316_v20 }
 0x20b   : > { %v324_v21 = vsel %vm322_vm7, 1e+30, %v301_v9 }
 0x20c   : > { %v326_v22 = vsel %vm303_vm3, %v324_v21, inf  ;;  %v500_v50 = vcvt.f32.s32 %v499_v45 }
 0x20d   : > { %327 = vmin.xlane.f32.xlu0 %v326_v22  ;;  %v319_v23 = vpop.xlane.xlu1 %318 }
 0x20e   : > { %vm323_vm8 = vcmp.eq.f32.partialorder %v298_v13, %v319_v23  ;;  %v501_v51 = vtrunc.f32 %v319_v23 }
 0x20f   : > { %v325_v24 = vsel %vm323_vm8, 1e+30, %v302_v11 }
 0x210   : > { %v329_v25 = vsel %vm303_vm3, %v325_v24, inf  ;;  %v502_v58 = vcvt.f32.s32 %v501_v51 }
 0x211   : > { %330 = vmin.xlane.f32.xlu1 %v329_v25 }
 0x29a   : > { %v328_v26 = vpop.xlane.xlu0 %327 }
 0x29b   : > { %vm332_vm9 = vcmp.le.f32.partialorder %v324_v21, %v328_v26 }
 0x29c   : > { %v334_v27 = vsel %vm332_vm9, %v298_v13, 16.0 }
 0x29d   : > { %v336_v28 = vsel %vm303_vm3, %v334_v27, inf }
 0x29e   : > { %v331_v29 = vpop.xlane.xlu1 %330  ;;  %337 = vmin.xlane.f32.xlu0 %v336_v28 }
 0x29f   : > { %vm333_vm10 = vcmp.le.f32.partialorder %v325_v24, %v331_v29 }
 0x2a0   : > { %v335_v30 = vsel %vm333_vm10, %v298_v13, 16.0 }
 0x2a1   : > { %v339_v31 = vsel %vm303_vm3, %v335_v30, inf }
 0x2a2   : > { %340 = vmin.xlane.f32.xlu1 %v339_v31 }
 0x32b   : > { %v338_v32 = vpop.xlane.xlu0 %337 }
 0x32c   : > { %vm344_vm11 = vcmp.eq.f32.partialorder %v298_v13, %v338_v32  ;;  %v503_v44 = vtrunc.f32 %v338_v32 }
 0x32d   : > { %v346_v33 = vsel %vm344_vm11, 1e+30, %v324_v21 }
 0x32e   : > { %v348_v34 = vsel %vm303_vm3, %v346_v33, inf  ;;  %v504_v46 = vcvt.f32.s32 %v503_v44 }
 0x32f   : > { %v341_v35 = vpop.xlane.xlu1 %340  ;;  %349 = vmin.xlane.f32.xlu0 %v348_v34 }
 0x330   : > { %vm345_vm12 = vcmp.eq.f32.partialorder %v298_v13, %v341_v35  ;;  %v505_v47 = vtrunc.f32 %v341_v35  ;;  %v367_v53 = vsel %vm366_vm15, %v500_v50, %v504_v46 }
 0x331   : > { %v347_v36 = vsel %vm345_vm12, 1e+30, %v325_v24 }
 0x332   : > { %v351_v37 = vsel %vm303_vm3, %v347_v36, inf  ;;  %v506_v54 = vcvt.f32.s32 %v505_v47 }
 0x333   : > { %352 = vmin.xlane.f32.xlu1 %v351_v37 }
 0x334   : > { %v368_v60 = vsel %vm366_vm15, %v502_v58, %v506_v54 }
 0x3bc   : > { %v350_v38 = vpop.xlane.xlu0 %349 }
 0x3bd   : > { %vm354_vm13 = vcmp.le.f32.partialorder %v346_v33, %v350_v38 }
 0x3be   : > { %v356_v39 = vsel %vm354_vm13, %v298_v13, 16.0 }
 0x3bf   : > { %v358_v40 = vsel %vm303_vm3, %v356_v39, inf }
 0x3c0   : > { %v353_v41 = vpop.xlane.xlu1 %352  ;;  %359 = vmin.xlane.f32.xlu0 %v358_v40 }
 0x3c1   : > { %vm355_vm14 = vcmp.le.f32.partialorder %v347_v36, %v353_v41 }
 0x3c2   : > { %v357_v42 = vsel %vm355_vm14, %v298_v13, 16.0 }
 0x3c3   : > { %v361_v43 = vsel %vm303_vm3, %v357_v42, inf }
 0x3c4   : > { %362 = vmin.xlane.f32.xlu1 %v361_v43 }
 0x44d   : > { %v360_v48 = vpop.xlane.xlu0 %359 }
 0x44e   : > { %v507_v49 = vtrunc.f32 %v360_v48 }
 0x450   : > { %v508_v52 = vcvt.f32.s32 %v507_v49 }
 0x451   : > { %v363_v55 = vpop.xlane.xlu1 %362 }
 0x452   : > { %v370_v56 = vsel %vm369_vm0, %v367_v53, %v508_v52  ;;  %v509_v57 = vtrunc.f32 %v363_v55 }
 0x453   : > { %373 = vst.msk [vmem:[%s198_s23] sm:$0xff] %vm372_vm1, %v370_v56 }
 0x454   : > { %v510_v59 = vcvt.f32.s32 %v509_v57 }
 0x456   : > { %v371_v61 = vsel %vm369_vm0, %v368_v60, %v510_v59 }
 0x457   : > { %374 = vst.msk [vmem:[%s198_s23 + $0x8] sm:$0xff] %vm372_vm1, %v371_v61 }
 0x458 PF: > { %s12_s11 = sadd.s32 1, %s557_s11   ;;  %s635_s9 = smov %s553_s10 }
 0x459   : > { %p9_p5 = scmp.ge.s32.totalorder %s12_s11, 4   ;;  %s636_s10 = smov %s638_s12 }
 0x45b   :  { %11 = sbr.rel (!%p9_p5) target bundleno = 2 (0x2), region = 61 }

// kernel: graph_conv_decoder_forward.7
= control target key start
LH: loop header
LB: loop body
LE: loop exit
PB: predicated region body
PF: predicated region fallthrough
CT: control target
= control target key end

     0   :  { %s888_s21 = smov 0   ;;  %s890_s22 = smov 0   ;;  %s955_s0 = inlined_call_operand.vmem [shape: s32[2,16,3], index: 0, kind: input, shape index: {}]   ;;  %s956_s1 = inlined_call_operand.vmem [shape: bf16[2,16,19], index: 1, kind: input, shape index: {}, may-alias: {1,2}]   ;;  %s957_s2 = inlined_call_operand.vmem [shape: bf16[2,16,19], index: 2, kind: input, shape index: {}, may-alias: {1,2}]   ;;  %s958_s3 = inlined_call_operand.vmem [shape: bf16[19,12], index: 3, kind: input, shape index: {}]   ;;  %s959_s4 = inlined_call_operand.vmem [shape: f32[1,12], index: 4, kind: input, shape index: {}]   ;;  %s960_s5 = inlined_call_operand.vmem [shape: bf16[19,12], index: 5, kind: input, shape index: {}]   ;;  %s961_s6 = inlined_call_operand.vmem [shape: bf16[2,16,15], index: 6, kind: output, shape index: {}]  }
   0x1   :  { %s892_s23 = smov 0  }
   0x2 LB: > { %s28_s24 = sadd.s32 1, %s840_s22  ;;  %p718_p0 = scmp.ge.s32.totalorder %s844_s23, 1  ;;  %s844_s23 = sphi %s892_s23, %s16_s23   ;;  %s840_s22 = sphi %s890_s22, %s963_s22   ;;  %s836_s21 = sphi %s888_s21, %s962_s21  }
   0x3   : > { %p30_p1 = scmp.ge.s32.totalorder %s28_s24, 2  ;;  %p260_p2 = scmp.lt.s32.totalorder %s844_s23, 3 }
   0x5   : > { %s965_s24 = smov (%p30_p1, %s28_s24), 0  ;;  %p261_p3 = pnand %p718_p0, %p260_p2 }
   0x6   : > { %p313_p4 = scmp.lt.s32.totalorder (!%p261_p3), %s836_s21, 1  ;;  %v846_v0 = vmov (!%p261_p3), 1   ;;  %v847_v1 = vmov (!%p261_p3), 0   ;;  %v848_v4 = vmov (!%p261_p3), 0.0   ;;  %v849_v5 = vmov (!%p261_p3), 2   ;;  %v818_v7 = vld [vmem:[%s960_s5] sm:$0xff] (!%p261_p3)  }
   0x7   : > { %264 = sbr.rel (%p261_p3) target bundleno = 718 (0x2ce), region = 44  ;;  %813 = vset.pattern.permute.xlu1 (!%p261_p3), %v846_v0  ;;  %812 = vset.pattern.permute.xlu0 (!%p261_p3), %v847_v1  ;;  %vm850_vm0 = vmmov (!%p261_p3), 0   ;;  %v354_v8 = vlaneseq (!%p261_p3)  ;;  %vm395_vm11 = vcmask (!%p261_p3), 130048   ;;  %v817_v18 = vld [vmem:[%s958_s3] sm:$0xff] (!%p261_p3)   ;;  %vm464_vm12 = vcmask (!%p261_p3), 1040384   ;;  %s852_s27 = smov (!%p261_p3), 3  }
   0x8   : > { %755 = vmatprep.subr.bf16.mxu0 (!%p261_p3), %v848_v4  ;;  %769 = vmatprep.subr.bf16.mxu1 (!%p261_p3), %v848_v4  ;;  %vm465_vm13 = vcmask (!%p261_p3), 1041408   ;;  %v851_v20 = vmov (!%p261_p3), 65535   ;;  %v820_v22 = vld [vmem:[%s960_s5 + $0x8] ss:$0 sps:$4 sm:$0x33] (!%p261_p3)   ;;  %vm460_vm14 = vcmask (!%p261_p3), 154624  }
   0x9   : > { %757 = vmatprep.mubr.msk.bf16.mxu0 (!%p261_p3), %vm850_vm0, %v848_v4  ;;  %773 = vmatprep.mubr.msk.bf16.mxu1 (!%p261_p3), %vm850_vm0, %v848_v4  ;;  %v355_v11 = vand.u32 (!%p261_p3), 127, %v354_v8  ;;  %v466_v21 = vsel (!%p261_p3), %vm464_vm12, 4294967295, %v851_v20  ;;  %v819_v23 = vld [vmem:[%s958_s3 + $0x8] ss:$0 sps:$4 sm:$0x33] (!%p261_p3)   ;;  %vm584_vm15 = vcmask (!%p261_p3), 23552  }
   0xa   : > { %770 = vmatpush3.bf16.msra.mxu1 (!%p261_p3), %v818_v7  ;;  %v467_v24 = vsel (!%p261_p3), %vm465_vm13, %v466_v21, 0  ;;  %v731_v37 = vld [vmem:[%s959_s4] ss:$0 sm:$0xff] (!%p261_p3) }
   0xb   : > { %771 = vmatprep.subr.bf16.mxu1 (!%p261_p3), %v848_v4  ;;  %v533_v25 = vand.u32 (!%p261_p3), %v820_v22, %v467_v24  ;;  %v469_v26 = vand.u32 (!%p261_p3), %v819_v23, %v467_v24 }
   0xe   : > { %s967_s21 = smov (!%p313_p4, %s836_s21), 1  ;;  %772 = vmatpush3.bf16.msra.mxu1 %v533_v25 }
   0xf   : > { %s743_s25 = sshll.u32 %s967_s21, 4  ;;  %s909_s29 = sshll.u32 %s967_s21, 3 }
  0x10   : > { %s320_s28 = scalar_lea.vmem %s955_s0, %s743_s25  ;;  %s326_s8 = scalar_lea.vmem %s956_s1, %s909_s29 }
  0x11   : > { %v348_v2 = vld [vmem:[%s320_s28] sm:$0xff]  ;;  %v349_v3 = vld [vmem:[%s320_s28 + $0x8] sm:$0xff]  ;;  %s335_s11 = scalar_lea.vmem %s957_s2, %s909_s29  ;;  %s345_s7 = scalar_lea.vmem %s961_s6, %s909_s29 }
  0x12   : > { %365 = vperm.xlu1 %813, %v348_v2   ;;  %357 = vperm.xlu0 %812, %v348_v2   ;;  %v816_v6 = vld [vmem:[%s326_s8] sm:$0xff]  }
  0x13   : > { %756 = vmatpush3.bf16.msra.mxu0 %v816_v6  ;;  %v821_v27 = vld [vmem:[%s335_s11] sm:$0xff]  }
  0x14   : > { %761 = vmatprep.subr.bf16.mxu0 %v848_v4  ;;  %774 = vmatmul.mubr.msk.bf16.vlgmr.msra.gmra.mrb[0].mxu1 %vm460_vm14, %v821_v27 }
  0x16   : > { %368 = vperm.xlu1 %813, %v349_v3   ;;  %360 = vperm.xlu0 %812, %v349_v3  }
  0x1a   : > { %815 = vset.pattern.permute.xlu1 %v849_v5  ;;  %814 = vset.pattern.permute.xlu0 %v849_v5 }
  0x1b   : > { %378 = vperm.xlu1 %815, %v349_v3   ;;  %375 = vperm.xlu0 %814, %v348_v2  }
  0x91   : > { %v366_v9 = vpop.permute.xlu1 %365  ;;  %v358_v10 = vpop.permute.xlu0 %357 }
  0x92   : > { %vm370_vm1 = vcmp.eq.s32.totalorder %v355_v11, %v366_v9  ;;  %vm362_vm2 = vcmp.eq.s32.totalorder %v355_v11, %v358_v10 }
  0x93   : > { %vm372_vm5 = vmor %vm362_vm2, %vm370_vm1 }
  0x95   : > { %v369_v12 = vpop.permute.xlu1 %368  ;;  %v361_v13 = vpop.permute.xlu0 %360 }
  0x96   : > { %vm371_vm3 = vcmp.eq.s32.totalorder %v355_v11, %v369_v12  ;;  %vm363_vm4 = vcmp.eq.s32.totalorder %v355_v11, %v361_v13 }
  0x97   : > { %vm373_vm6 = vmor %vm363_vm4, %vm371_vm3 }
  0x9a   : > { %v379_v14 = vpop.permute.xlu1 %378  ;;  %v376_v15 = vpop.permute.xlu0 %375 }
  0x9b   : > { %vm381_vm7 = vcmp.eq.s32.totalorder %v355_v11, %v379_v14  ;;  %vm380_vm8 = vcmp.eq.s32.totalorder %v355_v11, %v376_v15 }
  0x9c   : > { %vm383_vm9 = vmor %vm373_vm6, %vm381_vm7 }
  0x9d   : > { %v728_v16 = vsel %vm383_vm9, 1.0, %v848_v4  ;;  %vm382_vm10 = vmor %vm372_vm5, %vm380_vm8 }
  0x9e   : > { %v727_v17 = vsel %vm382_vm10, 1.0, %v848_v4 }
  0x9f   : > { %v388_v19 = vpack.c.bf16 %v728_v16, %v727_v17 }
  0xa1   : > { %758 = vmatmul.mubr.msk.bf16.vlgmr.msra.gmra.mrb[0].mxu0 %vm395_vm11, %v388_v19 }
  0xa2   : > { %762 = vmatpush3.bf16.msra.mxu0 %v817_v18  ;;  %765 = vmatprep.mubr.msk.bf16.mxu0 %vm850_vm0, %v848_v4  ;;  %vm594_vm0 = vcmask 117760  }
  0xa3   : > { %763 = vmatprep.subr.bf16.mxu0 %v848_v4 }
  0xa6   : > { %764 = vmatpush3.bf16.msra.mxu0 %v469_v26 }
  0xe7   : > { %v569_v33 = vpop.f32.mrb[0].mxu1 }
  0xe8   : > { %v775_v34 = vpop.f32.mrb[1].mxu1 }
  0xe9   : > { %v572_v35 = vpop.f32.mrb[2].mxu1 }
  0xea   : > { %v776_v36 = vpop.f32.mrb[3].mxu1 }
 0x174   : > { %v433_v28 = vpop.f32.mrb[0].mxu0 }
 0x175   : > { %v759_v29 = vpop.f32.mrb[1].mxu0 }
 0x176   : > { %v436_v30 = vpop.f32.mrb[2].mxu0 }
 0x177   : > { %v440_v31 = vpack.c.bf16 %v436_v30, %v433_v28  ;;  %v760_v32 = vpop.f32.mrb[3].mxu0 }
 0x179   : > { %766 = vmatmul.mubr.msk.bf16.vlgmr.msra.gmra.mrb[4].mxu0 %vm460_vm14, %v440_v31 }
 0x24c   : > { %v505_v38 = vpop.f32.mrb[4].mxu0 }
 0x24d   : > { %v506_v39 = vadd.f32 %v731_v37, %v505_v38  ;;  %v767_v40 = vpop.f32.mrb[5].mxu0 }
 0x24e   : > { %v508_v41 = vpop.f32.mrb[6].mxu0 }
 0x24f   : > { %v576_v42 = vadd.f32 %v569_v33, %v506_v39  ;;  %v509_v43 = vadd.f32 %v731_v37, %v508_v41  ;;  %v768_v44 = vpop.f32.mrb[7].mxu0 }
 0x251   : > { %v577_v45 = vadd.f32 %v572_v35, %v509_v43  ;;  %v578_v46 = vmax.f32 %v576_v42, 0.0 }
 0x253   : > { %v579_v47 = vmax.f32 %v577_v45, 0.0 }
 0x255   : > { %v580_v48 = vpack.c.bf16 %v579_v47, %v578_v46 }
 0x257   : > { %582 = vrot.lane.b32.xlu1 %v580_v48, %s852_s27 }
 0x2c9   : > { %v583_v49 = vpop.permute.xlu1 %582 }
 0x2ca   : > { %v586_v50 = vsel %vm584_vm15, %v821_v27, %v583_v49 }
 0x2cb   : > { %v739_v51 = vcombine.low %v586_v50, %v586_v50  ;;  %v740_v52 = vcombine.high %v586_v50, %v586_v50 }
 0x2cd   : > { %595 = vst.msk [vmem:[%s345_s7] sm:$0xf] %vm594_vm0, %v739_v51  ;;  %596 = vst.msk [vmem:[%s345_s7 + $0x4] sm:$0xf] %vm594_vm0, %v740_v52 }
 0x2ce PF: > { %s16_s23 = sadd.s32 1, %s844_s23   ;;  %s962_s21 = smov %s840_s22 }
 0x2cf   : > { %p13_p5 = scmp.ge.s32.totalorder %s16_s23, 4   ;;  %s963_s22 = smov %s965_s24 }
 0x2d1   :  { %15 = sbr.rel (!%p13_p5) target bundleno = 2 (0x2), region = 80 }

// kernel: graph_conv_decoder_forward.8
= control target key start
LH: loop header
LB: loop body
LE: loop exit
PB: predicated region body
PF: predicated region fallthrough
CT: control target
= control target key end

     0   :  { %s870_s21 = smov 0   ;;  %s872_s22 = smov 0   ;;  %s931_s0 = inlined_call_operand.vmem [shape: s32[2,16,3], index: 0, kind: input, shape index: {}]   ;;  %s932_s1 = inlined_call_operand.vmem [shape: bf16[2,16,15], index: 1, kind: input, shape index: {}, may-alias: {1,2}]   ;;  %s933_s2 = inlined_call_operand.vmem [shape: bf16[2,16,15], index: 2, kind: input, shape index: {}, may-alias: {1,2}]   ;;  %s934_s3 = inlined_call_operand.vmem [shape: bf16[15,12], index: 3, kind: input, shape index: {}]   ;;  %s935_s4 = inlined_call_operand.vmem [shape: f32[1,12], index: 4, kind: input, shape index: {}]   ;;  %s936_s5 = inlined_call_operand.vmem [shape: bf16[15,12], index: 5, kind: input, shape index: {}]   ;;  %s937_s6 = inlined_call_operand.vmem [shape: bf16[2,16,15], index: 6, kind: output, shape index: {}]  }
   0x1   :  { %s874_s23 = smov 0  }
   0x2 LB: > { %s28_s24 = sadd.s32 1, %s822_s22  ;;  %p708_p0 = scmp.ge.s32.totalorder %s826_s23, 1  ;;  %s826_s23 = sphi %s874_s23, %s16_s23   ;;  %s822_s22 = sphi %s872_s22, %s939_s22   ;;  %s818_s21 = sphi %s870_s21, %s938_s21  }
   0x3   : > { %p30_p1 = scmp.ge.s32.totalorder %s28_s24, 2  ;;  %p260_p2 = scmp.lt.s32.totalorder %s826_s23, 3 }
   0x5   : > { %s941_s24 = smov (%p30_p1, %s28_s24), 0  ;;  %p261_p3 = pnand %p708_p0, %p260_p2 }
   0x6   : > { %p313_p4 = scmp.lt.s32.totalorder (!%p261_p3), %s818_s21, 1  ;;  %v828_v0 = vmov (!%p261_p3), 1   ;;  %v829_v1 = vmov (!%p261_p3), 0   ;;  %v830_v4 = vmov (!%p261_p3), 0.0   ;;  %v831_v5 = vmov (!%p261_p3), 2   ;;  %v802_v18 = vld [vmem:[%s934_s3] sm:$0xff] (!%p261_p3)  }
   0x7   : > { %264 = sbr.rel (%p261_p3) target bundleno = 728 (0x2d8), region = 44  ;;  %797 = vset.pattern.permute.xlu1 (!%p261_p3), %v828_v0  ;;  %796 = vset.pattern.permute.xlu0 (!%p261_p3), %v829_v1  ;;  %vm832_vm0 = vmmov (!%p261_p3), 0   ;;  %v354_v7 = vlaneseq (!%p261_p3)  ;;  %vm395_vm11 = vcmask (!%p261_p3), 130048   ;;  %vm459_vm12 = vcmask (!%p261_p3), 1046528   ;;  %v803_v23 = vld [vmem:[%s936_s5] sm:$0xff] (!%p261_p3)   ;;  %s834_s20 = smov (!%p261_p3), 3  }
   0x8   : > { %741 = vmatprep.subr.bf16.mxu0 (!%p261_p3), %v830_v4  ;;  %747 = vmatprep.subr.bf16.mxu1 (!%p261_p3), %v830_v4  ;;  %vm460_vm13 = vcmask (!%p261_p3), 1047552   ;;  %v833_v19 = vmov (!%p261_p3), 65535   ;;  %vm455_vm14 = vcmask (!%p261_p3), 121856   ;;  %v721_v31 = vld [vmem:[%s935_s4] ss:$0 sm:$0xff] (!%p261_p3)  ;;  %vm574_vm15 = vcmask (!%p261_p3), 23552  }
   0x9   : > { %743 = vmatprep.mubr.msk.bf16.mxu0 (!%p261_p3), %vm832_vm0, %v830_v4  ;;  %749 = vmatprep.mubr.msk.bf16.mxu1 (!%p261_p3), %vm832_vm0, %v830_v4  ;;  %v355_v10 = vand.u32 (!%p261_p3), 127, %v354_v7  ;;  %v461_v20 = vsel (!%p261_p3), %vm459_vm12, 4294967295, %v833_v19 }
   0xa   : > { %v462_v21 = vsel (!%p261_p3), %vm460_vm13, %v461_v20, 0 }
   0xb   : > { %v464_v22 = vand.u32 (!%p261_p3), %v802_v18, %v462_v21  ;;  %v523_v26 = vand.u32 (!%p261_p3), %v803_v23, %v462_v21 }
   0xd   : > { %748 = vmatpush3.bf16.msra.mxu1 (!%p261_p3), %v464_v22 }
   0xe   : > { %s943_s21 = smov (!%p313_p4, %s818_s21), 1  ;;  %753 = vmatprep.subr.bf16.mxu1 %v830_v4 }
   0xf   : > { %s731_s25 = sshll.u32 %s943_s21, 4  ;;  %s891_s29 = sshll.u32 %s943_s21, 3 }
  0x10   : > { %s320_s28 = scalar_lea.vmem %s931_s0, %s731_s25  ;;  %s326_s8 = scalar_lea.vmem %s932_s1, %s891_s29 }
  0x11   : > { %v348_v2 = vld [vmem:[%s320_s28] sm:$0xff]  ;;  %v349_v3 = vld [vmem:[%s320_s28 + $0x8] sm:$0xff]  ;;  %s335_s11 = scalar_lea.vmem %s933_s2, %s891_s29  ;;  %s345_s26 = scalar_lea.vmem %s937_s6, %s891_s29 }
  0x12   : > { %365 = vperm.xlu1 %797, %v348_v2   ;;  %357 = vperm.xlu0 %796, %v348_v2   ;;  %v800_v6 = vld [vmem:[%s326_s8] sm:$0xff]  }
  0x13   : > { %742 = vmatpush3.bf16.msra.mxu0 %v800_v6  ;;  %v801_v30 = vld [vmem:[%s335_s11] sm:$0xff]  }
  0x16   : > { %368 = vperm.xlu1 %797, %v349_v3   ;;  %360 = vperm.xlu0 %796, %v349_v3  }
  0x1a   : > { %799 = vset.pattern.permute.xlu1 %v831_v5  ;;  %798 = vset.pattern.permute.xlu0 %v831_v5 }
  0x1b   : > { %378 = vperm.xlu1 %799, %v349_v3   ;;  %375 = vperm.xlu0 %798, %v348_v2  }
  0x91   : > { %v366_v8 = vpop.permute.xlu1 %365  ;;  %v358_v9 = vpop.permute.xlu0 %357 }
  0x92   : > { %vm370_vm1 = vcmp.eq.s32.totalorder %v355_v10, %v366_v8  ;;  %vm362_vm2 = vcmp.eq.s32.totalorder %v355_v10, %v358_v9 }
  0x93   : > { %vm372_vm5 = vmor %vm362_vm2, %vm370_vm1 }
  0x95   : > { %v369_v11 = vpop.permute.xlu1 %368  ;;  %v361_v12 = vpop.permute.xlu0 %360 }
  0x96   : > { %vm371_vm3 = vcmp.eq.s32.totalorder %v355_v10, %v369_v11  ;;  %vm363_vm4 = vcmp.eq.s32.totalorder %v355_v10, %v361_v12 }
  0x97   : > { %vm373_vm6 = vmor %vm363_vm4, %vm371_vm3 }
  0x9a   : > { %v379_v13 = vpop.permute.xlu1 %378  ;;  %v376_v14 = vpop.permute.xlu0 %375 }
  0x9b   : > { %vm381_vm7 = vcmp.eq.s32.totalorder %v355_v10, %v379_v13  ;;  %vm380_vm8 = vcmp.eq.s32.totalorder %v355_v10, %v376_v14 }
  0x9c   : > { %vm383_vm9 = vmor %vm373_vm6, %vm381_vm7 }
  0x9d   : > { %v718_v15 = vsel %vm383_vm9, 1.0, %v830_v4  ;;  %vm382_vm10 = vmor %vm372_vm5, %vm380_vm8 }
  0x9e   : > { %v717_v16 = vsel %vm382_vm10, 1.0, %v830_v4 }
  0x9f   : > { %v388_v17 = vpack.c.bf16 %v718_v15, %v717_v16 }
  0xa1   : > { %744 = vmatmul.mubr.msk.bf16.vlgmr.msra.gmra.mrb[0].mxu0 %vm395_vm11, %v388_v17 }
 0x174   : > { %v433_v24 = vpop.f32.mrb[0].mxu0 }
 0x175   : > { %v745_v25 = vpop.f32.mrb[1].mxu0 }
 0x176   : > { %v436_v27 = vpop.f32.mrb[2].mxu0 }
 0x177   : > { %v440_v28 = vpack.c.bf16 %v436_v27, %v433_v24  ;;  %v746_v29 = vpop.f32.mrb[3].mxu0 }
 0x179   : > { %750 = vmatmul.mubr.msk.bf16.vlgmr.msra.gmra.mrb[0].mxu1 %vm455_vm14, %v440_v28 }
 0x17a   : > { %754 = vmatpush3.bf16.msra.mxu1 %v523_v26  ;;  %755 = vmatprep.mubr.msk.bf16.mxu1 %vm832_vm0, %v830_v4  ;;  %vm584_vm0 = vcmask 117760  }
 0x185   : > { %756 = vmatmul.mubr.msk.bf16.vlgmr.msra.gmra.mrb[0].mxu1 %vm455_vm14, %v801_v30 }
 0x258   : > { %v559_v32 = vpop.f32.mrb[0].mxu1 }
 0x259   : > { %v759_v33 = vadd.f32 %v721_v31, %v559_v32  ;;  %v757_v34 = vpop.f32.mrb[1].mxu1 }
 0x25a   : > { %v562_v35 = vpop.f32.mrb[2].mxu1 }
 0x25b   : > { %v760_v36 = vadd.f32 %v721_v31, %v562_v35  ;;  %v758_v37 = vpop.f32.mrb[3].mxu1  ;;  %v568_v38 = vmax.f32 %v759_v33, 0.0 }
 0x25d   : > { %v569_v39 = vmax.f32 %v760_v36, 0.0 }
 0x25f   : > { %v570_v40 = vpack.c.bf16 %v569_v39, %v568_v38 }
 0x261   : > { %572 = vrot.lane.b32.xlu1 %v570_v40, %s834_s20 }
 0x2d3   : > { %v573_v41 = vpop.permute.xlu1 %572 }
 0x2d4   : > { %v576_v42 = vsel %vm574_vm15, %v801_v30, %v573_v41 }
 0x2d5   : > { %v727_v43 = vcombine.low %v576_v42, %v576_v42  ;;  %v728_v44 = vcombine.high %v576_v42, %v576_v42 }
 0x2d7   : > { %585 = vst.msk [vmem:[%s345_s26] sm:$0xf] %vm584_vm0, %v727_v43  ;;  %586 = vst.msk [vmem:[%s345_s26 + $0x4] sm:$0xf] %vm584_vm0, %v728_v44 }
 0x2d8 PF: > { %s16_s23 = sadd.s32 1, %s826_s23   ;;  %s938_s21 = smov %s822_s22 }
 0x2d9   : > { %p13_p5 = scmp.ge.s32.totalorder %s16_s23, 4   ;;  %s939_s22 = smov %s941_s24 }
 0x2db   :  { %15 = sbr.rel (!%p13_p5) target bundleno = 2 (0x2), region = 80 }

// kernel: graph_conv_decoder_forward.5
= control target key start
LH: loop header
LB: loop body
LE: loop exit
PB: predicated region body
PF: predicated region fallthrough
CT: control target
= control target key end

     0   :  { %s2113_s30 = smov 0   ;;  %s2115_s20 = smov 0   ;;  %s2290_s0 = inlined_call_operand.vmem [shape: f32[2,16,3], index: 0, kind: input, shape index: {}]   ;;  %s2291_s1 = inlined_call_operand.vmem [shape: f32[2,16,8], index: 1, kind: input, shape index: {}]   ;;  %s2292_s2 = inlined_call_operand.vmem [shape: bf16[2,64,6], index: 2, kind: input, shape index: {}]   ;;  %s2293_s3 = inlined_call_operand.vmem [shape: bf16[2,16,10], index: 3, kind: input, shape index: {}]   ;;  %s2294_s4 = inlined_call_operand.vmem [shape: s32[2,64], index: 4, kind: input, shape index: {}]   ;;  %s2295_s5 = inlined_call_operand.vmem [shape: s32[2,16], index: 5, kind: input, shape index: {}]   ;;  %s2296_s6 = inlined_call_operand.vmem [shape: bf16[3,4], index: 6, kind: input, shape index: {}]   ;;  %s2297_s7 = inlined_call_operand.vmem [shape: bf16[8,4], index: 7, kind: input, shape index: {}]   ;;  %s2298_s8 = inlined_call_operand.vmem [shape: f32[1,4], index: 8, kind: input, shape index: {}]   ;;  %s2299_s9 = inlined_call_operand.vmem [shape: bf16[4,4], index: 9, kind: input, shape index: {}]   ;;  %s2300_s10 = inlined_call_operand.vmem [shape: f32[1,4], index: 10, kind: input, shape index: {}]   ;;  %s2301_s11 = inlined_call_operand.vmem [shape: f32[3,2], index: 11, kind: input, shape index: {}]   ;;  %s2302_s12 = inlined_call_operand.vmem [shape: f32[4,2], index: 12, kind: input, shape index: {}]   ;;  %s2303_s13 = inlined_call_operand.vmem [shape: f32[1,2], index: 13, kind: input, shape index: {}]   ;;  %s2304_s14 = inlined_call_operand.vmem [shape: bf16[6,8], index: 14, kind: input, shape index: {}]   ;;  %s2305_s15 = inlined_call_operand.vmem [shape: bf16[10,8], index: 15, kind: input, shape index: {}]   ;;  %s2306_s16 = inlined_call_operand.vmem [shape: f32[1,8], index: 16, kind: input, shape index: {}]   ;;  %s2307_s17 = inlined_call_operand.vmem [shape: bf16[8,8], index: 17, kind: input, shape index: {}]   ;;  %s2308_s18 = inlined_call_operand.vmem [shape: f32[1,8], index: 18, kind: input, shape index: {}]   ;;  %s2309_s19 = inlined_call_operand.vmem [shape: bf16[2,16,19], index: 19, kind: output, shape index: {}]  }
   0x1   :  { %2310 = sst [smem:[#allocation3_spill]] %s2290_s0  ;;  %s2111_s0 = smov 0  }
   0x2   :  { %2311 = sst [smem:[#allocation4_spill]] %s2291_s1 }
   0x3   :  { %2312 = sst [smem:[#allocation5_spill]] %s2292_s2 }
   0x4   :  { %2313 = sst [smem:[#allocation6_spill]] %s2293_s3 }
   0x5   :  { %2314 = sst [smem:[#allocation7_spill]] %s2296_s6 }
   0x6   :  { %2315 = sst [smem:[#allocation8_spill]] %s2297_s7 }
   0x7 LB: > { %s41_s21 = sadd.s32 1, %s1998_s30  ;;  %p1771_p0 = scmp.ge.s32.totalorder %s2002_s20, 1  ;;  %s2002_s20 = sphi %s2115_s20, %s29_s20   ;;  %s1998_s30 = sphi %s2113_s30, %s2325_s30   ;;  %s1994_s0 = sphi %s2111_s0, %s2324_s0  }
   0x8   : > { %p43_p1 = scmp.ge.s32.totalorder %s41_s21, 2  ;;  %p595_p2 = scmp.lt.s32.totalorder %s2002_s20, 3 }
   0xa   : > { %s2327_s21 = smov (%p43_p1, %s41_s21), 0  ;;  %p596_p3 = pnand %p1771_p0, %p595_p2 }
   0xb   : > { %2316 = sst [smem:[#allocation2_spill]] %s2327_s21  ;;  %s2317_s7 = sld [smem:[#allocation8_spill]] (!%p596_p3)  ;;  %vm731_vm0 = vcmask (!%p596_p3), 1043456   ;;  %v2004_v2 = vmov (!%p596_p3), 0.0   ;;  %vm780_vm1 = vcmask (!%p596_p3), 1040384   ;;  %vm781_vm2 = vcmask (!%p596_p3), 1041408  }
   0xc   : > { %599 = sbr.rel (%p596_p3) target bundleno = 1870 (0x74e), region = 96  ;;  %s2318_s6 = sld [smem:[#allocation7_spill]] (!%p596_p3)  ;;  %1849 = vmatprep.subr.bf16.mxu0 (!%p596_p3), %v2004_v2  ;;  %1855 = vmatprep.subr.bf16.mxu1 (!%p596_p3), %v2004_v2  ;;  %v2005_v4 = vmov (!%p596_p3), 65535   ;;  %vm2006_vm3 = vmmov (!%p596_p3), 0   ;;  %vm727_vm4 = vcmask (!%p596_p3), 64512   ;;  %vm776_vm5 = vcmask (!%p596_p3), 23552  }
   0xd   : > { %p679_p4 = scmp.lt.s32.totalorder (!%p596_p3), %s1994_s0, 1  ;;  %v782_v5 = vsel (!%p596_p3), %vm780_vm1, 4294967295, %v2005_v4  ;;  %1851 = vmatprep.mubr.msk.bf16.mxu0 (!%p596_p3), %vm2006_vm3, %v2004_v2  ;;  %1857 = vmatprep.mubr.msk.bf16.mxu1 (!%p596_p3), %vm2006_vm3, %v2004_v2  ;;  %s2319_s27 = sld [smem:[#allocation4_spill]] (!%p596_p3)  ;;  %v840_v14 = vld [vmem:[%s2299_s9] sm:$0x3] (!%p596_p3)  ;;  %vm848_vm6 = vcmask (!%p596_p3), 31744  }
   0xe   : > { %v783_v6 = vsel (!%p596_p3), %vm781_vm2, %v782_v5, 0  ;;  %s2320_s22 = sld [smem:[#allocation5_spill]] (!%p596_p3)  ;;  %v853_v15 = vsel (!%p596_p3), %vm781_vm2, %v840_v14, 0  ;;  %v899_v16 = vld [vmem:[%s2302_s12] sm:$0xf] (!%p596_p3)  ;;  %vm990_vm7 = vcmask (!%p596_p3), 1042432  }
   0xf   : > { %v1784_v19 = vld [vmem:[%s2298_s8] ss:$0 sm:$0xff] (!%p596_p3)  ;;  %v2007_v43 = vmov (!%p596_p3), 1   ;;  %v2008_v5 = vmov (!%p596_p3), 0   ;;  %s2009_s26 = smov (!%p596_p3), 3   ;;  %s2010_s29 = smov (!%p596_p3), 11  }
  0x10   : > { %v898_v33 = vld [vmem:[%s2301_s11] sm:$0x7] (!%p596_p3)  ;;  %1960 = vset.pattern.permute.xlu1 (!%p596_p3), %v2007_v43  ;;  %1961 = vset.pattern.permute.xlu0 (!%p596_p3), %v2007_v43 }
  0x11   : > { %v726_v0 = vld [vmem:[%s2317_s7] sm:$0xf] (!%p596_p3)  ;;  %s2321_s7 = sld [smem:[#allocation3_spill]] (!%p596_p3) }
  0x12   : > { %v725_v1 = vld [vmem:[%s2318_s6] sm:$0x3] (!%p596_p3)  ;;  %v733_v3 = vsel (!%p596_p3), %vm731_vm0, %v726_v0, 0 }
  0x13   : > { %1850 = vmatpush3.bf16.msra.mxu0 %v733_v3  ;;  %s2329_s0 = smov (!%p679_p4, %s1994_s0), 1  ;;  %v785_v7 = vand.u32 %v783_v6, %v725_v1  ;;  %v1785_v34 = vld [vmem:[%s2300_s10] ss:$0 sm:$0xff] }
  0x14   : > { %1861 = vmatprep.subr.bf16.mxu0 %v2004_v2  ;;  %s1819_s24 = sshll.u32 %s2329_s0, 4  ;;  %s1821_s25 = sshll.u32 %s2329_s0, 5  ;;  %v1793_v44 = vld [vmem:[%s2303_s13] ss:$0 sm:$0xff] }
  0x15   : > { %1856 = vmatpush3.bf16.msra.mxu1 %v785_v7  ;;  %s696_s28 = scalar_lea.vmem %s2319_s27, %s1819_s24  ;;  %s2154_s2 = scalar_lea.vmem %s2320_s22, %s1821_s25 }
  0x16   : > { %v721_v8 = vld [vmem:[%s696_s28] sm:$0xff]  ;;  %v722_v9 = vld [vmem:[%s696_s28 + $0x8] sm:$0xff]  ;;  %1867 = vmatprep.subr.msk.mxu1 %vm731_vm0, %v899_v16  ;;  %s2322_s27 = sld [smem:[#allocation6_spill]] }
  0x17   : > { %s686_s21 = scalar_lea.vmem %s2321_s7, %s1819_s24  ;;  %v2159_v10 = vpack.c.bf16 %v722_v9, %v721_v8 }
  0x18   : > { %v719_v11 = vld [vmem:[%s686_s21] sm:$0xff]  ;;  %v720_v12 = vld [vmem:[%s686_s21 + $0x8] sm:$0xff]  ;;  %s1822_s21 = sshll.u32 %s2329_s0, 3 }
  0x19   : > { %v2161_v13 = vpack.c.bf16 %v720_v12, %v719_v11  ;;  %1852 = vmatmul.mubr.msk.bf16.vlgmr.msra.gmra.mrb[0].mxu0 %vm727_vm4, %v2159_v10 }
  0x1a   : > { %1863 = vmatprep.mubr.msk.bf16.mxu0 %vm2006_vm3, %v2004_v2  ;;  %1862 = vmatpush3.bf16.msra.mxu0 %v853_v15 }
  0x1b   : > { %1858 = vmatmul.mubr.msk.bf16.vlgmr.msra.gmra.mrb[0].mxu1 %vm776_vm5, %v2161_v13  ;;  %1877 = vmatprep.subr.bf16.mxu0 %v2004_v2 }
  0x1c   : > { %1868 = vmatpush3.msk.msra.mxu1 %vm731_vm0, %v899_v16  ;;  %s2244_s28 = scalar_lea.vmem %s2322_s27, %s1822_s21 }
  0x1d   : > { %1872 = vmatprep.subr.msk.mxu1 %vm990_vm7, %v898_v33 }
  0xec   : > { %v769_v17 = vpop.f32.mrb[0].mxu0 }
  0xed   : > { %v1853_v20 = vpop.f32.mrb[1].mxu0 }
  0xee   : > { %v821_v18 = vpop.f32.mrb[0].mxu1  ;;  %v772_v23 = vpop.f32.mrb[2].mxu0 }
  0xef   : > { %v822_v21 = vadd.f32 %v821_v18, %v769_v17  ;;  %v1859_v22 = vpop.f32.mrb[1].mxu1  ;;  %v1854_v25 = vpop.f32.mrb[3].mxu0 }
  0xf0   : > { %v824_v24 = vpop.f32.mrb[2].mxu1 }
  0xf1   : > { %v835_v26 = vadd.f32 %v1784_v19, %v822_v21  ;;  %v825_v27 = vadd.f32 %v824_v24, %v772_v23  ;;  %v1860_v28 = vpop.f32.mrb[3].mxu1  ;;  %v1974_v21 = vld [vmem:[%s2154_s2] sm:$0xff]   ;;  %v1975_v24 = vld [vmem:[%s2154_s2 + $0x8] sm:$0xff]  }
  0xf2   : > { %v1976_v28 = vld [vmem:[%s2154_s2 + $0x10] sm:$0xff]  }
  0xf3   : > { %v836_v29 = vadd.f32 %v1784_v19, %v825_v27  ;;  %v837_v30 = vmax.f32 %v835_v26, 0.0 }
  0xf5   : > { %v838_v31 = vmax.f32 %v836_v29, 0.0 }
  0xf7   : > { %v839_v32 = vpack.c.bf16 %v838_v31, %v837_v30 }
  0xf9   : > { %1864 = vmatmul.mubr.msk.bf16.vlgmr.msra.gmra.mrb[4].mxu0 %vm848_vm6, %v839_v32  ;;  %v1977_v32 = vld [vmem:[%s2154_s2 + $0x18] sm:$0xff]   ;;  %s716_s2 = scalar_lea.vmem %s2309_s19, %s1822_s21 }
  0xfa   : > { %1885 = vmatprep.mubr.msk.bf16.mxu0 %vm2006_vm3, %v2004_v2  ;;  %1878 = vmatpush3.bf16.msra.mxu0 %v1974_v21 }
  0xfb   : > { %1879 = vmatprep.subr.bf16.mxu0 %v2004_v2 }
  0xfe   : > { %1880 = vmatpush3.bf16.msra.mxu0 %v1975_v24 }
  0xff   : > { %1881 = vmatprep.subr.bf16.mxu0 %v2004_v2 }
 0x102   : > { %1882 = vmatpush3.bf16.msra.mxu0 %v1976_v28  ;;  %v1807_v28 = vld [vmem:[%s2295_s5] ss:$0 sm:$0xff] }
 0x103   : > { %1883 = vmatprep.subr.bf16.mxu0 %v2004_v2 }
 0x106   : > { %1884 = vmatpush3.bf16.msra.mxu0 %v1977_v32 }
 0x107   : > { %1907 = vmatprep.subr.bf16.mxu0 %v2004_v2 }
 0x1cc   : > { %v889_v35 = vpop.f32.mrb[4].mxu0 }
 0x1cd   : > { %v890_v36 = vadd.f32 %v1785_v34, %v889_v35  ;;  %v1865_v37 = vpop.f32.mrb[5].mxu0 }
 0x1ce   : > { %v892_v38 = vpop.f32.mrb[6].mxu0 }
 0x1cf   : > { %v896_v39 = vmax.f32 %v890_v36, 0.0  ;;  %v893_v40 = vadd.f32 %v1785_v34, %v892_v38  ;;  %v1866_v41 = vpop.f32.mrb[7].mxu0 }
 0x1d1   : > { %v897_v42 = vmax.f32 %v893_v40, 0.0  ;;  %1869 = vmatprep.mubr.msk.f32.mxu1 %vm848_vm6, %v896_v39 }
 0x1d3   : > { %1870 = vmatmul.mubr.msk.f32.vlgmr.msra.gmra.mrb[4].mxu1 %vm848_vm6, %v897_v42 }
 0x1d4   : > { %1873 = vmatpush3.msk.msra.mxu1 %vm990_vm7, %v898_v33  ;;  %1874 = vmatprep.mubr.msk.f32.mxu1 %vm776_vm5, %v719_v11 }
 0x1d5   : > { %1889 = vmatprep.subr.bf16.mxu1 %v2004_v2 }
 0x1db   : > { %1875 = vmatmul.mubr.msk.f32.vlgmr.msra.gmra.mrb[4].mxu1 %vm776_vm5, %v720_v12 }
 0x1dc   : > { %1891 = vmatprep.mubr.msk.bf16.mxu1 %vm2006_vm3, %v2004_v2 }
 0x2ae   : > { %v1876_v45 = vpop.f32.mrb[4].mxu1 }
 0x2af   : > { %v1077_v46 = vadd.f32 %v1876_v45, %v1793_v44  ;;  %v1060_v47 = vpop.f32.mrb[5].mxu1 }
 0x2b0   : > { %v1076_v48 = vadd.f32 %v1793_v44, %v1060_v47 }
 0x2b1   : > { %v1090_v49 = vadd.f32 1.0, %v1077_v46 }
 0x2b2   : > { %v1089_v50 = vadd.f32 1.0, %v1076_v48 }
 0x2b3   : > { %v1092_v51 = vmul.f32 4.0, %v1090_v49  ;;  %v1336_v4 = vmul.f32 2.0, %v1090_v49 }
 0x2b4   : > { %v1091_v52 = vmul.f32 4.0, %v1089_v50  ;;  %v1335_v9 = vmul.f32 2.0, %v1089_v50 }
 0x2b5   : > { %v1795_v53 = vadd.f32 -0.5, %v1092_v51  ;;  %v1806_v7 = vadd.f32 -0.5, %v1336_v4 }
 0x2b6   : > { %v1794_v54 = vadd.f32 -0.5, %v1091_v52  ;;  %v1805_v15 = vadd.f32 -0.5, %v1335_v9  ;;  %v1274_v9 = vld [vmem:[%s2304_s14] sm:$0x7] }
 0x2b7   : > { %v1096_v55 = vmax.f32 %v1795_v53, 0.0  ;;  %v1340_v8 = vmax.f32 %v1806_v7, 0.0  ;;  %v1796_v53 = vld [vmem:[%s2294_s4] ss:$0 sm:$0xff] }
 0x2b8   : > { %v1095_v56 = vmax.f32 %v1794_v54, 0.0  ;;  %v1339_v19 = vmax.f32 %v1805_v15, 0.0  ;;  %v1797_v54 = vld [vmem:[%s2294_s4 + $0x1] ss:$0 sm:$0xff] }
 0x2b9   : > { %v1098_v57 = vmin.f32 %v1096_v55, 7.0  ;;  %v1342_v14 = vmin.f32 %v1340_v8, 3.0 }
 0x2ba   : > { %v1097_v58 = vmin.f32 %v1095_v56, 7.0  ;;  %v1341_v22 = vmin.f32 %v1339_v19, 3.0 }
 0x2bb   : > { %v1100_v59 = vfloor.f32 %v1098_v57  ;;  %v1344_v18 = vfloor.f32 %v1342_v14 }
 0x2bc   : > { %v1099_v62 = vfloor.f32 %v1097_v58  ;;  %v1343_v26 = vfloor.f32 %v1341_v22 }
 0x2bd   : > { %v1102_v60 = vsub.f32 %v1098_v57, %v1100_v59  ;;  %v1923_v61 = vtrunc.f32 %v1100_v59  ;;  %v1927_v23 = vtrunc.f32 %v1344_v18  ;;  %v1346_v25 = vsub.f32 %v1342_v14, %v1344_v18 }
 0x2be   : > { %v1101_v0 = vsub.f32 %v1097_v58, %v1099_v62  ;;  %v1921_v3 = vtrunc.f32 %v1099_v62  ;;  %v1925_v30 = vtrunc.f32 %v1343_v26  ;;  %v1345_v34 = vsub.f32 %v1341_v22, %v1343_v26 }
 0x2bf   : > { %1152 = vperm.xlu1 %1960, %v1102_v60   ;;  %v1924_v63 = vcvt.f32.s32 %v1923_v61  ;;  %v1124_v1 = vsub.f32 1.0, %v1102_v60  ;;  %v1928_v27 = vcvt.f32.s32 %v1927_v23  ;;  %v1368_v29 = vsub.f32 1.0, %v1346_v25 }
 0x2c0   : > { %v1922_v6 = vcvt.f32.s32 %v1921_v3  ;;  %v1123_v12 = vsub.f32 1.0, %v1101_v0  ;;  %v1926_v33 = vcvt.f32.s32 %v1925_v30  ;;  %v1367_v36 = vsub.f32 1.0, %v1345_v34 }
 0x2c1   : > { %1119 = vperm.xlu0 %1961, %v1924_v63   ;;  %v1106_v11 = vadd.s32 1, %v1924_v63  ;;  %v1350_v31 = vadd.s32 1, %v1928_v27 }
 0x2c2   : > { %v1105_v16 = vadd.s32 1, %v1922_v6  ;;  %v1349_v37 = vadd.s32 1, %v1926_v33 }
 0x2c3   : > { %1147 = vperm.xlu1 %1960, %v1101_v0   ;;  %vm1109_vm8 = vcmp.lt.s32.totalorder %v1106_v11, 7  ;;  %vm1353_vm10 = vcmp.lt.s32.totalorder %v1350_v31, 3 }
 0x2c4   : > { %v1110_v17 = vsel %vm1109_vm8, %v1106_v11, 7  ;;  %vm1107_vm9 = vcmp.lt.s32.totalorder %v1105_v16, 7  ;;  %v1354_v35 = vsel %vm1353_vm10, %v1350_v31, 3  ;;  %vm1351_vm11 = vcmp.lt.s32.totalorder %v1349_v37, 3 }
 0x2c5   : > { %1132 = vperm.xlu0 %1961, %v1124_v1   ;;  %v1108_v20 = vsel %vm1107_vm9, %v1105_v16, 7  ;;  %v1352_v38 = vsel %vm1351_vm11, %v1349_v37, 3  ;;  %vm1228_vm9 = vcmask 523264   ;;  %v1280_v11 = vsel %vm990_vm7, %v1274_v9, 0 }
 0x2c6   : > { %1890 = vmatpush3.bf16.msra.mxu1 %v1280_v11 }
 0x2c7   : > { %1962 = vset.pattern.permute.xlu1 %v2008_v5  ;;  %1895 = vmatprep.subr.bf16.mxu1 %v2004_v2 }
 0x2c8   : > { %1167 = vperm.xlu1 %1962, %v1924_v63  }
 0x2c9   : > { %1116 = vperm.xlu0 %1961, %v1922_v6  }
 0x2cc   : > { %1176 = vperm.xlu1 %1962, %v1124_v1  }
 0x2cd   : > { %1963 = vset.pattern.permute.xlu0 %v2008_v5 }
 0x2ce   : > { %1164 = vperm.xlu0 %1963, %v1922_v6  }
 0x2d0   : > { %1964 = vset.pattern.permute.xlu1 %v2007_v43 }
 0x2d1   : > { %1127 = vperm.xlu1 %1964, %v1123_v12  }
 0x2d2   : > { %1172 = vperm.xlu0 %1963, %v1123_v12  }
 0x2d5   : > { %1141 = vperm.xlu1 %1964, %v1110_v17  }
 0x2d6   : > { %1185 = vperm.xlu0 %1963, %v1110_v17  }
 0x2d9   : > { %1138 = vperm.xlu1 %1964, %v1108_v20  }
 0x2da   : > { %1194 = vperm.xlu0 %1963, %v1102_v60  }
 0x2dd   : > { %1965 = vset.pattern.permute.xlu1 %v2008_v5 }
 0x2de   : > { %1967 = vset.pattern.permute.xlu0 %v2007_v43  ;;  %1182 = vperm.xlu1 %1965, %v1108_v20  }
 0x2df   : > { %1363 = vperm.xlu0 %1967, %v1928_v27  }
 0x2e2   : > { %1190 = vperm.xlu1 %1965, %v1101_v0  }
 0x2e3   : > { %1376 = vperm.xlu0 %1967, %v1368_v29  }
 0x2e6   : > { %1966 = vset.pattern.permute.xlu1 %v2007_v43 }
 0x2e7   : > { %1970 = vset.pattern.permute.xlu0 %v2008_v5  ;;  %1360 = vperm.xlu1 %1966, %v1926_v33  }
 0x2e8   : > { %1408 = vperm.xlu0 %1970, %v1926_v33  }
 0x2eb   : > { %1385 = vperm.xlu1 %1966, %v1354_v35  }
 0x2ec   : > { %1429 = vperm.xlu0 %1970, %v1354_v35  }
 0x2ef   : > { %1968 = vset.pattern.permute.xlu1 %v2008_v5 }
 0x2f0   : > { %1416 = vperm.xlu0 %1970, %v1367_v36   ;;  %1411 = vperm.xlu1 %1968, %v1928_v27  }
 0x2f4   : > { %1438 = vperm.xlu0 %1970, %v1346_v25   ;;  %1969 = vset.pattern.permute.xlu1 %v2007_v43 }
 0x2f5   : > { %1371 = vperm.xlu1 %1969, %v1367_v36  }
 0x2f9   : > { %1391 = vperm.xlu1 %1969, %v1345_v34  }
 0x2fd   : > { %1396 = vperm.xlu1 %1969, %v1346_v25  }
 0x301   : > { %1971 = vset.pattern.permute.xlu1 %v2008_v5 }
 0x302   : > { %1420 = vperm.xlu1 %1971, %v1368_v29   ;;  %v1808_v29 = vld [vmem:[%s2295_s5 + $0x1] ss:$0 sm:$0xff] }
 0x306   : > { %1972 = vset.pattern.permute.xlu1 %v2007_v43 }
 0x307   : > { %1382 = vperm.xlu1 %1972, %v1352_v38  }
 0x30b   : > { %1973 = vset.pattern.permute.xlu1 %v2008_v5 }
 0x30c   : > { %1426 = vperm.xlu1 %1973, %v1352_v38   ;;  %v1978_v38 = vld [vmem:[%s2244_s28] sm:$0xff]  }
 0x310   : > { %1434 = vperm.xlu1 %1973, %v1345_v34  }
 0x314   : > { %1618 = vrot.lane.b32.xlu1 %v2159_v10, %s2009_s26 }
 0x33e   : > { %v1153_v39 = vpop.permute.xlu1 %1152 }
 0x340   : > { %v1120_v40 = vpop.permute.xlu0 %1119 }
 0x341   : > { %vm1122_vm1 = vcmp.eq.s32.totalorder %v1796_v53, %v1120_v40 }
 0x342   : > { %v1148_v41 = vpop.permute.xlu1 %1147 }
 0x344   : > { %v1133_v42 = vpop.permute.xlu0 %1132 }
 0x345   : > { %v1136_v62 = vsel %vm1122_vm1, %v1133_v42, 0.0 }
 0x347   : > { %v1168_v44 = vpop.permute.xlu1 %1167 }
 0x348   : > { %v1117_v45 = vpop.permute.xlu0 %1116  ;;  %vm1170_vm15 = vcmp.eq.s32.totalorder %v1797_v54, %v1168_v44 }
 0x349   : > { %vm1121_vm2 = vcmp.eq.s32.totalorder %v1796_v53, %v1117_v45 }
 0x34b   : > { %v1177_v46 = vpop.permute.xlu1 %1176 }
 0x34c   : > { %v1180_v57 = vsel %vm1170_vm15, %v1177_v46, 0.0 }
 0x34d   : > { %v1165_v47 = vpop.permute.xlu0 %1164 }
 0x34e   : > { %vm1169_vm6 = vcmp.eq.s32.totalorder %v1797_v54, %v1165_v47 }
 0x350   : > { %v1128_v48 = vpop.permute.xlu1 %1127 }
 0x351   : > { %v1173_v49 = vpop.permute.xlu0 %1172  ;;  %v1135_v63 = vsel %vm1121_vm2, %v1128_v48, 0.0 }
 0x352   : > { %v1179_v0 = vsel %vm1169_vm6, %v1173_v49, 0.0  ;;  %vm1511_vm6 = vcmask 1044480  }
 0x354   : > { %v1142_v50 = vpop.permute.xlu1 %1141 }
 0x355   : > { %v1186_v51 = vpop.permute.xlu0 %1185  ;;  %vm1144_vm12 = vcmp.eq.s32.totalorder %v1796_v53, %v1142_v50 }
 0x356   : > { %vm1188_vm13 = vcmp.eq.s32.totalorder %v1797_v54, %v1186_v51  ;;  %v1156_v58 = vsel %vm1144_vm12, %v1153_v39, 0.0  ;;  %v1979_v51 = vld [vmem:[%s2305_s15] sm:$0x1f]  }
 0x357   : > { %v1158_v3 = vadd.f32 %v1156_v58, %v1136_v62 }
 0x358   : > { %v1139_v52 = vpop.permute.xlu1 %1138 }
 0x359   : > { %v1195_v43 = vpop.permute.xlu0 %1194  ;;  %vm1143_vm14 = vcmp.eq.s32.totalorder %v1796_v53, %v1139_v52  ;;  %v1513_v53 = vsel %vm1511_vm6, %v1979_v51, 0 }
 0x35a   : > { %v1198_v56 = vsel %vm1188_vm13, %v1195_v43, 0.0  ;;  %v1155_v59 = vsel %vm1143_vm14, %v1148_v41, 0.0  ;;  %vm1275_vm14 = vcmask 48128  }
 0x35b   : > { %v1200_v60 = vadd.f32 %v1198_v56, %v1180_v57  ;;  %v1157_v4 = vadd.f32 %v1155_v59, %v1135_v63  ;;  %v1561_v59 = vld [vmem:[%s2307_s17] sm:$0xf] }
 0x35d   : > { %v1183_v55 = vpop.permute.xlu1 %1182  ;;  %v1202_v6 = vmul.f32 %v1200_v60, %v1158_v3  ;;  %v1573_v60 = vsel %vm731_vm0, %v1561_v59, 0  ;;  %vm1625_vm0 = vcmask 89088  }
 0x35e   : > { %vm1187_vm8 = vcmp.eq.s32.totalorder %v1797_v54, %v1183_v55  ;;  %v1364_v18 = vpop.permute.xlu0 %1363 }
 0x35f   : > { %vm1366_vm2 = vcmp.eq.s32.totalorder %v1807_v28, %v1364_v18 }
 0x361   : > { %v1191_v61 = vpop.permute.xlu1 %1190 }
 0x362   : > { %v1197_v1 = vsel %vm1187_vm8, %v1191_v61, 0.0  ;;  %v1377_v20 = vpop.permute.xlu0 %1376  ;;  %vm1454_vm8 = vcmask 130048   ;;  %v1804_v61 = vld [vmem:[%s2306_s16] ss:$0 sm:$0xff] }
 0x363   : > { %v1199_v5 = vadd.f32 %v1197_v1, %v1179_v0  ;;  %v1380_v48 = vsel %vm1366_vm2, %v1377_v20, 0.0 }
 0x365   : > { %v1201_v7 = vmul.f32 %v1199_v5, %v1157_v4 }
 0x366   : > { %v1361_v12 = vpop.permute.xlu1 %1360 }
 0x367   : > { %v1203_v8 = vpack.c.bf16 %v1202_v6, %v1201_v7  ;;  %v1409_v22 = vpop.permute.xlu0 %1408  ;;  %vm1365_vm11 = vcmp.eq.s32.totalorder %v1807_v28, %v1361_v12  ;;  %v1813_v7 = vld [vmem:[%s2308_s18] ss:$0 sm:$0xff] }
 0x368   : > { %vm1413_vm12 = vcmp.eq.s32.totalorder %v1808_v29, %v1409_v22 }
 0x369   : > { %1886 = vmatmul.mubr.msk.bf16.vlgmr.msra.gmra.mrb[8].mxu0 %vm1228_vm9, %v1203_v8  ;;  %vm1507_vm9 = vcmask 80896  }
 0x36a   : > { %1909 = vmatprep.mubr.msk.bf16.mxu0 %vm2006_vm3, %v2004_v2  ;;  %v1386_v14 = vpop.permute.xlu1 %1385  ;;  %1908 = vmatpush3.bf16.msra.mxu0 %v1573_v60 }
 0x36b   : > { %v1430_v24 = vpop.permute.xlu0 %1429  ;;  %vm1388_vm15 = vcmp.eq.s32.totalorder %v1807_v28, %v1386_v14 }
 0x36c   : > { %vm1432_vm1 = vcmp.eq.s32.totalorder %v1808_v29, %v1430_v24 }
 0x36f   : > { %v1412_v15 = vpop.permute.xlu1 %1411  ;;  %v1417_v26 = vpop.permute.xlu0 %1416 }
 0x370   : > { %vm1414_vm13 = vcmp.eq.s32.totalorder %v1808_v29, %v1412_v15  ;;  %v1423_v34 = vsel %vm1413_vm12, %v1417_v26, 0.0 }
 0x373   : > { %v1439_v32 = vpop.permute.xlu0 %1438 }
 0x374   : > { %v1372_v16 = vpop.permute.xlu1 %1371  ;;  %v1442_v42 = vsel %vm1432_vm1, %v1439_v32, 0.0 }
 0x375   : > { %v1379_v44 = vsel %vm1365_vm11, %v1372_v16, 0.0 }
 0x378   : > { %v1392_v17 = vpop.permute.xlu1 %1391 }
 0x37c   : > { %v1397_v19 = vpop.permute.xlu1 %1396 }
 0x37d   : > { %v1400_v45 = vsel %vm1388_vm15, %v1397_v19, 0.0 }
 0x37e   : > { %v1402_v49 = vadd.f32 %v1400_v45, %v1380_v48 }
 0x381   : > { %v1421_v21 = vpop.permute.xlu1 %1420 }
 0x382   : > { %v1424_v35 = vsel %vm1414_vm13, %v1421_v21, 0.0 }
 0x383   : > { %v1444_v46 = vadd.f32 %v1442_v42, %v1424_v35 }
 0x385   : > { %v1446_v52 = vmul.f32 %v1444_v46, %v1402_v49 }
 0x386   : > { %v1383_v23 = vpop.permute.xlu1 %1382 }
 0x387   : > { %vm1387_vm7 = vcmp.eq.s32.totalorder %v1807_v28, %v1383_v23 }
 0x388   : > { %v1399_v36 = vsel %vm1387_vm7, %v1392_v17, 0.0 }
 0x389   : > { %v1401_v47 = vadd.f32 %v1399_v36, %v1379_v44 }
 0x38b   : > { %v1427_v25 = vpop.permute.xlu1 %1426 }
 0x38c   : > { %vm1431_vm10 = vcmp.eq.s32.totalorder %v1808_v29, %v1427_v25 }
 0x38f   : > { %v1435_v27 = vpop.permute.xlu1 %1434 }
 0x390   : > { %v1441_v30 = vsel %vm1431_vm10, %v1435_v27, 0.0 }
 0x391   : > { %v1443_v39 = vadd.f32 %v1441_v30, %v1423_v34 }
 0x393   : > { %v1445_v50 = vmul.f32 %v1443_v39, %v1401_v47  ;;  %v1619_v17 = vpop.permute.xlu1 %1618 }
 0x394   : > { %v1624_v18 = vsel %vm776_vm5, %v2161_v13, %v1619_v17 }
 0x395   : > { %v1447_v43 = vpack.c.bf16 %v1446_v52, %v1445_v50 }
 0x43c   : > { %v1266_v31 = vpop.f32.mrb[8].mxu0 }
 0x43d   : > { %v1887_v33 = vpop.f32.mrb[9].mxu0 }
 0x43e   : > { %v1269_v37 = vpop.f32.mrb[10].mxu0 }
 0x43f   : > { %v1273_v40 = vpack.c.bf16 %v1269_v37, %v1266_v31  ;;  %v1888_v41 = vpop.f32.mrb[11].mxu0 }
 0x441   : > { %1892 = vmatmul.mubr.msk.bf16.vlgmr.msra.gmra.mrb[8].mxu1 %vm1275_vm14, %v1273_v40 }
 0x442   : > { %1896 = vmatpush3.bf16.msra.mxu1 %v1978_v38  ;;  %1897 = vmatprep.mubr.msk.bf16.mxu1 %vm2006_vm3, %v2004_v2 }
 0x443   : > { %1901 = vmatprep.subr.bf16.mxu1 %v2004_v2 }
 0x449   : > { %1898 = vmatmul.mubr.msk.bf16.vlgmr.msra.gmra.mrb[12].mxu1 %vm1454_vm8, %v1447_v43 }
 0x44a   : > { %1902 = vmatpush3.bf16.msra.mxu1 %v1513_v53  ;;  %1903 = vmatprep.mubr.msk.bf16.mxu1 %vm2006_vm3, %v2004_v2  ;;  %vm1635_vm3 = vcmask 150528  }
 0x51c   : > { %v1492_v54 = vpop.f32.mrb[12].mxu1 }
 0x51d   : > { %v1899_v55 = vpop.f32.mrb[13].mxu1 }
 0x51e   : > { %v1495_v56 = vpop.f32.mrb[14].mxu1 }
 0x51f   : > { %v1499_v57 = vpack.c.bf16 %v1495_v56, %v1492_v54  ;;  %v1900_v58 = vpop.f32.mrb[15].mxu1 }
 0x521   : > { %1904 = vmatmul.mubr.msk.bf16.vlgmr.msra.gmra.mrb[8].mxu1 %vm1507_vm9, %v1499_v57 }
 0x5f4   : > { %v1549_v62 = vpop.f32.mrb[8].mxu1 }
 0x5f5   : > { %v1913_v2 = vadd.f32 %v1804_v61, %v1549_v62  ;;  %v1905_v63 = vpop.f32.mrb[9].mxu1 }
 0x5f6   : > { %v1552_v0 = vpop.f32.mrb[10].mxu1 }
 0x5f7   : > { %v1914_v1 = vadd.f32 %v1804_v61, %v1552_v0  ;;  %v1906_v3 = vpop.f32.mrb[11].mxu1  ;;  %v1558_v4 = vmax.f32 %v1913_v2, 0.0 }
 0x5f9   : > { %v1559_v5 = vmax.f32 %v1914_v1, 0.0 }
 0x5fb   : > { %v1560_v6 = vpack.c.bf16 %v1559_v5, %v1558_v4 }
 0x5fd   : > { %1910 = vmatmul.mubr.msk.bf16.vlgmr.msra.gmra.mrb[12].mxu0 %vm727_vm4, %v1560_v6 }
 0x6d0   : > { %v1609_v8 = vpop.f32.mrb[12].mxu0 }
 0x6d1   : > { %v1911_v9 = vpop.f32.mrb[13].mxu0  ;;  %v1610_v12 = vadd.f32 %v1813_v7, %v1609_v8 }
 0x6d2   : > { %v1612_v11 = vpop.f32.mrb[14].mxu0 }
 0x6d3   : > { %v1613_v14 = vadd.f32 %v1813_v7, %v1612_v11  ;;  %v1912_v15 = vpop.f32.mrb[15].mxu0 }
 0x6d5   : > { %v1616_v16 = vpack.c.bf16 %v1613_v14, %v1610_v12 }
 0x6d7   : > { %1621 = vrot.lane.b32.xlu0 %v1616_v16, %s2010_s29 }
 0x749   : > { %v1622_v19 = vpop.permute.xlu0 %1621 }
 0x74a   : > { %v1627_v10 = vsel %vm1625_vm0, %v1624_v18, %v1622_v19 }
 0x74b   : > { %v1815_v20 = vcombine.low %v1627_v10, %v1627_v10  ;;  %v1816_v21 = vcombine.high %v1627_v10, %v1627_v10 }
 0x74d   : > { %1636 = vst.msk [vmem:[%s716_s2] sm:$0xf] %vm1635_vm3, %v1815_v20  ;;  %1637 = vst.msk [vmem:[%s716_s2 + $0x4] sm:$0xf] %vm1635_vm3, %v1816_v21 }
 0x74e PF: > { %s29_s20 = sadd.s32 1, %s2002_s20   ;;  %s2323_s23 = sld [smem:[#allocation2_spill]] }
 0x74f   : > { %p26_p5 = scmp.ge.s32.totalorder %s29_s20, 4   ;;  %s2324_s0 = smov %s1998_s30 }
 0x751   :  { %28 = sbr.rel (!%p26_p5) target bundleno = 7 (0x7), region = 135 }
 0x754   : > { %s2325_s30 = smov %s2323_s23 }

// kernel: graph_conv_decoder_forward.9
= control target key start
LH: loop header
LB: loop body
LE: loop exit
PB: predicated region body
PF: predicated region fallthrough
CT: control target
= control target key end

     0   :  { %s1360_s17 = smov 0   ;;  %s1362_s18 = smov 0   ;;  %s1441_s0 = inlined_call_operand.vmem [shape: s32[2,16,3], index: 0, kind: input, shape index: {}]   ;;  %s1442_s1 = inlined_call_operand.vmem [shape: bf16[2,16,15], index: 1, kind: input, shape index: {}, may-alias: {1,2}]   ;;  %s1443_s2 = inlined_call_operand.vmem [shape: bf16[2,16,15], index: 2, kind: input, shape index: {}, may-alias: {1,2}]   ;;  %s1444_s3 = inlined_call_operand.vmem [shape: f32[2,16,3], index: 3, kind: input, shape index: {}]   ;;  %s1445_s4 = inlined_call_operand.vmem [shape: bf16[15,8], index: 4, kind: input, shape index: {}]   ;;  %s1446_s5 = inlined_call_operand.vmem [shape: f32[1,8], index: 5, kind: input, shape index: {}]   ;;  %s1447_s6 = inlined_call_operand.vmem [shape: bf16[15,8], index: 6, kind: input, shape index: {}]   ;;  %s1448_s7 = inlined_call_operand.vmem [shape: f32[3,3], index: 7, kind: input, shape index: {}]   ;;  %s1449_s8 = inlined_call_operand.vmem [shape: f32[8,3], index: 8, kind: input, shape index: {}]   ;;  %s1450_s9 = inlined_call_operand.vmem [shape: f32[1,3], index: 9, kind: input, shape index: {}]   ;;  %s1451_s10 = inlined_call_operand.vmem [shape: f32[2,16,8], index: 10, kind: output, shape index: {0}]   ;;  %s1452_s11 = inlined_call_operand.vmem [shape: f32[2,16,3], index: 11, kind: output, shape index: {1}]  }
   0x1   :  { %s1364_s19 = smov 0  }
   0x2 LB: > { %s34_s20 = sadd.s32 1, %s1288_s18  ;;  %p1143_p0 = scmp.ge.s32.totalorder %s1292_s19, 1  ;;  %s1292_s19 = sphi %s1364_s19, %s22_s19   ;;  %s1288_s18 = sphi %s1362_s18, %s1454_s18   ;;  %s1284_s17 = sphi %s1360_s17, %s1453_s17  }
   0x3   : > { %p36_p1 = scmp.ge.s32.totalorder %s34_s20, 2  ;;  %p407_p2 = scmp.lt.s32.totalorder %s1292_s19, 3 }
   0x5   : > { %s1456_s20 = smov (%p36_p1, %s34_s20), 0  ;;  %p408_p3 = pnand %p1143_p0, %p407_p2 }
   0x6   : > { %p488_p4 = scmp.lt.s32.totalorder (!%p408_p3), %s1284_s17, 1  ;;  %v1294_v0 = vmov (!%p408_p3), 1   ;;  %v1295_v1 = vmov (!%p408_p3), 0   ;;  %v1296_v4 = vmov (!%p408_p3), 0.0   ;;  %v1297_v5 = vmov (!%p408_p3), 2   ;;  %v1264_v18 = vld [vmem:[%s1445_s4] sm:$0xff] (!%p408_p3)  }
   0x7   : > { %411 = sbr.rel (%p408_p3) target bundleno = 844 (0x34c), region = 60  ;;  %1259 = vset.pattern.permute.xlu1 (!%p408_p3), %v1294_v0  ;;  %1258 = vset.pattern.permute.xlu0 (!%p408_p3), %v1295_v1  ;;  %vm1298_vm0 = vmmov (!%p408_p3), 0   ;;  %v549_v7 = vlaneseq (!%p408_p3)  ;;  %vm590_vm11 = vcmask (!%p408_p3), 130048   ;;  %vm654_vm12 = vcmask (!%p408_p3), 1046528   ;;  %v771_v23 = vld [vmem:[%s1449_s8] sm:$0xff] (!%p408_p3) }
   0x8   : > { %1192 = vmatprep.subr.bf16.mxu0 (!%p408_p3), %v1296_v4  ;;  %1198 = vmatprep.subr.bf16.mxu1 (!%p408_p3), %v1296_v4  ;;  %vm655_vm13 = vcmask (!%p408_p3), 1047552   ;;  %v1299_v19 = vmov (!%p408_p3), 65535   ;;  %v1265_v24 = vld [vmem:[%s1447_s6] sm:$0xff] (!%p408_p3)   ;;  %vm650_vm14 = vcmask (!%p408_p3), 121856   ;;  %vm860_vm15 = vcmask (!%p408_p3), 1042432  }
   0x9   : > { %1194 = vmatprep.mubr.msk.bf16.mxu0 (!%p408_p3), %vm1298_vm0, %v1296_v4  ;;  %1200 = vmatprep.mubr.msk.bf16.mxu1 (!%p408_p3), %vm1298_vm0, %v1296_v4  ;;  %v550_v10 = vand.u32 (!%p408_p3), 127, %v549_v7  ;;  %v656_v20 = vsel (!%p408_p3), %vm654_vm12, 4294967295, %v1299_v19  ;;  %v770_v32 = vld [vmem:[%s1448_s7] sm:$0x7] (!%p408_p3) }
   0xa   : > { %v657_v21 = vsel (!%p408_p3), %vm655_vm13, %v656_v20, 0  ;;  %v1160_v33 = vld [vmem:[%s1446_s5] ss:$0 sm:$0xff] (!%p408_p3) }
   0xb   : > { %v659_v22 = vand.u32 (!%p408_p3), %v1264_v18, %v657_v21  ;;  %v718_v27 = vand.u32 (!%p408_p3), %v1265_v24, %v657_v21  ;;  %v1171_v44 = vld [vmem:[%s1450_s9] ss:$0 sm:$0xff] (!%p408_p3) }
   0xd   : > { %1199 = vmatpush3.bf16.msra.mxu1 (!%p408_p3), %v659_v22 }
   0xe   : > { %s1458_s17 = smov (!%p488_p4, %s1284_s17), 1  ;;  %1204 = vmatprep.subr.bf16.mxu1 %v1296_v4 }
   0xf   : > { %s1378_s21 = sshll.u32 %s1458_s17, 4  ;;  %s1175_s25 = sshll.u32 %s1458_s17, 3 }
  0x10   : > { %s495_s24 = scalar_lea.vmem %s1441_s0, %s1378_s21  ;;  %s501_s28 = scalar_lea.vmem %s1442_s1, %s1175_s25 }
  0x11   : > { %v543_v2 = vld [vmem:[%s495_s24] sm:$0xff]  ;;  %v544_v3 = vld [vmem:[%s495_s24 + $0x8] sm:$0xff]  ;;  %s1390_s12 = scalar_lea.vmem %s1443_s2, %s1175_s25  ;;  %s530_s29 = scalar_lea.vmem %s1451_s10, %s1378_s21 }
  0x12   : > { %560 = vperm.xlu1 %1259, %v543_v2   ;;  %552 = vperm.xlu0 %1258, %v543_v2   ;;  %v1262_v6 = vld [vmem:[%s501_s28] sm:$0xff]   ;;  %s520_s13 = scalar_lea.vmem %s1444_s3, %s1378_s21  ;;  %s540_s22 = scalar_lea.vmem %s1452_s11, %s1378_s21 }
  0x13   : > { %1193 = vmatpush3.bf16.msra.mxu0 %v1262_v6  ;;  %v1263_v31 = vld [vmem:[%s1390_s12] sm:$0xff]   ;;  %v769_v43 = vld [vmem:[%s520_s13 + $0x8] sm:$0xff] }
  0x14   : > { %1210 = vmatprep.subr.mxu0 %v771_v23  ;;  %v768_v42 = vld [vmem:[%s520_s13] sm:$0xff] }
  0x16   : > { %563 = vperm.xlu1 %1259, %v544_v3   ;;  %555 = vperm.xlu0 %1258, %v544_v3  }
  0x1a   : > { %1261 = vset.pattern.permute.xlu1 %v1297_v5  ;;  %1260 = vset.pattern.permute.xlu0 %v1297_v5 }
  0x1b   : > { %573 = vperm.xlu1 %1261, %v544_v3   ;;  %570 = vperm.xlu0 %1260, %v543_v2  }
  0x91   : > { %v561_v8 = vpop.permute.xlu1 %560  ;;  %v553_v9 = vpop.permute.xlu0 %552 }
  0x92   : > { %vm565_vm1 = vcmp.eq.s32.totalorder %v550_v10, %v561_v8  ;;  %vm557_vm2 = vcmp.eq.s32.totalorder %v550_v10, %v553_v9 }
  0x93   : > { %vm567_vm5 = vmor %vm557_vm2, %vm565_vm1  ;;  %vm853_vm1 = vcmask 23552  }
  0x95   : > { %v564_v11 = vpop.permute.xlu1 %563  ;;  %v556_v12 = vpop.permute.xlu0 %555 }
  0x96   : > { %vm566_vm3 = vcmp.eq.s32.totalorder %v550_v10, %v564_v11  ;;  %vm558_vm4 = vcmp.eq.s32.totalorder %v550_v10, %v556_v12 }
  0x97   : > { %vm568_vm6 = vmor %vm558_vm4, %vm566_vm3 }
  0x9a   : > { %v574_v13 = vpop.permute.xlu1 %573  ;;  %v571_v14 = vpop.permute.xlu0 %570 }
  0x9b   : > { %vm576_vm7 = vcmp.eq.s32.totalorder %v550_v10, %v574_v13  ;;  %vm575_vm8 = vcmp.eq.s32.totalorder %v550_v10, %v571_v14 }
  0x9c   : > { %vm578_vm9 = vmor %vm568_vm6, %vm576_vm7 }
  0x9d   : > { %v1157_v15 = vsel %vm578_vm9, 1.0, %v1296_v4  ;;  %vm577_vm10 = vmor %vm567_vm5, %vm575_vm8 }
  0x9e   : > { %v1156_v16 = vsel %vm577_vm10, 1.0, %v1296_v4 }
  0x9f   : > { %v583_v17 = vpack.c.bf16 %v1157_v15, %v1156_v16 }
  0xa1   : > { %1195 = vmatmul.mubr.msk.bf16.vlgmr.msra.gmra.mrb[0].mxu0 %vm590_vm11, %v583_v17 }
  0xa2   : > { %1211 = vmatpush3.msra.mxu0 %v771_v23 }
  0xa3   : > { %1215 = vmatprep.subr.msk.mxu0 %vm860_vm15, %v770_v32 }
 0x174   : > { %v628_v25 = vpop.f32.mrb[0].mxu0 }
 0x175   : > { %v1196_v26 = vpop.f32.mrb[1].mxu0 }
 0x176   : > { %v631_v28 = vpop.f32.mrb[2].mxu0 }
 0x177   : > { %v635_v29 = vpack.c.bf16 %v631_v28, %v628_v25  ;;  %v1197_v30 = vpop.f32.mrb[3].mxu0 }
 0x179   : > { %1201 = vmatmul.mubr.msk.bf16.vlgmr.msra.gmra.mrb[0].mxu1 %vm650_vm14, %v635_v29 }
 0x17a   : > { %1205 = vmatpush3.bf16.msra.mxu1 %v718_v27  ;;  %1206 = vmatprep.mubr.msk.bf16.mxu1 %vm1298_vm0, %v1296_v4  ;;  %vm765_vm0 = vcmask 64512  }
 0x185   : > { %1207 = vmatmul.mubr.msk.bf16.vlgmr.msra.gmra.mrb[0].mxu1 %vm650_vm14, %v1263_v31 }
 0x258   : > { %v754_v34 = vpop.f32.mrb[0].mxu1 }
 0x259   : > { %v1220_v35 = vadd.f32 %v1160_v33, %v754_v34  ;;  %v1208_v36 = vpop.f32.mrb[1].mxu1 }
 0x25a   : > { %v757_v37 = vpop.f32.mrb[2].mxu1 }
 0x25b   : > { %v763_v38 = vmax.f32 %v1220_v35, 0.0  ;;  %v1221_v39 = vadd.f32 %v1160_v33, %v757_v37  ;;  %v1209_v40 = vpop.f32.mrb[3].mxu1 }
 0x25d   : > { %v764_v41 = vmax.f32 %v1221_v39, 0.0  ;;  %766 = vst.msk [vmem:[%s530_s29] sm:$0xff] %vm765_vm0, %v763_v38  ;;  %1212 = vmatprep.mubr.msk.f32.mxu0 %vm765_vm0, %v763_v38 }
 0x25f   : > { %767 = vst.msk [vmem:[%s530_s29 + $0x8] sm:$0xff] %vm765_vm0, %v764_v41  ;;  %1213 = vmatmul.mubr.msk.f32.vlgmr.msra.gmra.mrb[4].mxu0 %vm765_vm0, %v764_v41 }
 0x260   : > { %1216 = vmatpush3.msk.msra.mxu0 %vm860_vm15, %v770_v32  ;;  %1217 = vmatprep.mubr.msk.f32.mxu0 %vm853_vm1, %v768_v42 }
 0x267   : > { %1218 = vmatmul.mubr.msk.f32.vlgmr.msra.gmra.mrb[4].mxu0 %vm853_vm1, %v769_v43 }
 0x33a   : > { %v1219_v45 = vpop.f32.mrb[4].mxu0 }
 0x33b   : > { %v947_v46 = vadd.f32 %v1219_v45, %v1171_v44  ;;  %v930_v47 = vpop.f32.mrb[5].mxu0 }
 0x33c   : > { %v946_v48 = vadd.f32 %v1171_v44, %v930_v47 }
 0x33d   : > { %1266 = vtanh.f32 %v947_v46 }
 0x33e   : > { %1268 = vtanh.f32 %v946_v48 }
 0x347   : > { %v1267_v49 = vpop.eup %1266 }
 0x348   : > { %v1269_v50 = vpop.eup %1268  ;;  %v951_v51 = vadd.f32 %v1267_v49, %v769_v43 }
 0x349   : > { %v950_v52 = vadd.f32 %v1269_v50, %v768_v42 }
 0x34a   : > { %953 = vst.msk [vmem:[%s540_s22 + $0x8] sm:$0xff] %vm853_vm1, %v951_v51 }
 0x34b   : > { %952 = vst.msk [vmem:[%s540_s22] sm:$0xff] %vm853_vm1, %v950_v52 }
 0x34c PF: > { %s22_s19 = sadd.s32 1, %s1292_s19   ;;  %s1453_s17 = smov %s1288_s18 }
 0x34d   : > { %p19_p5 = scmp.ge.s32.totalorder %s22_s19, 4   ;;  %s1454_s18 = smov %s1456_s20 }
 0x34f   :  { %21 = sbr.rel (!%p19_p5) target bundleno = 2 (0x2), region = 111 }

</bundles_post_ra>
